<compile_context>
chip_gen: v6e
topology: v6e:2x2x1
jax: 0.10.0
libtpu: 0.0.40
codegen_flags: <defaults>
</compile_context>

<pallas_src>
from functools import partial

import jax
import jax.numpy as jnp
from jax.experimental import pallas as pl
from jax.experimental.pallas import tpu as pltpu


OUT_LANES = 128  # lane-dense output slab width (first 9 lanes hold flattened R)


# --------------------------------------------------------------------------------------
# Fused Pallas kernel: one grid step == TB batch elements.
# --------------------------------------------------------------------------------------
def qtor_fused_kernel(q_ref, pool_ref, bc_ref,
                      ew1_ref, eb1_ref, ew2_ref, eb2_ref,
                      ew3_ref, eb3_ref, ew4_ref, eb4_ref,
                      rw1z_ref, rw2_ref, rb2_ref, rw3_ref, rb3_ref,
                      out_ref):
    f32 = jnp.float32
    bf16 = jnp.bfloat16

    TB, N, _ = q_ref.shape
    C, Hr = bc_ref.shape
    H = ew1_ref.shape[1]

    q = q_ref[...].reshape(TB * N, 3)                # [TB*N, 3] f32 (leading-dim collapse)
    w1 = ew1_ref[...]                                # [3, H] f32

    # --- Encoder phi MLP ----------------------------------------------------------------
    # K=3 first layer: MXU-starved, so use three VPU broadcast FMAs instead of a matmul.
    h = (q[:, 0:1] * w1[0:1, :] + q[:, 1:2] * w1[1:2, :] + q[:, 2:3] * w1[2:3, :]
         + eb1_ref[...])
    h = jnp.maximum(h, 0.0)                                                            # [TB*N, H]
    h = jnp.dot(h.astype(bf16), ew2_ref[...], preferred_element_type=f32) + eb2_ref[...]
    h = jnp.maximum(h, 0.0)                                                            # [TB*N, H]

    # --- Masked mean pooling (per batch row; N-sublane reduce, no [B, B*N] matrix) -------
    pooled = jnp.sum(h.reshape(TB, N, H) * pool_ref[...], axis=1)                      # [TB, H]

    # --- Encoder rho MLP ------------------------------------------------------------------
    g = jnp.dot(pooled.astype(bf16), ew3_ref[...], preferred_element_type=f32) + eb3_ref[...]
    g = jnp.maximum(g, 0.0)                                                            # [TB, H]
    z = jnp.dot(g.astype(bf16), ew4_ref[...], preferred_element_type=f32) + eb4_ref[...]   # [TB, L]

    # --- RotationHead ----------------------------------------------------------------------
    #   relu(cat(z, B_flat) @ W1 + b1) == relu(z @ W1[:L]  +  (B_flat @ W1[L:] + b1))
    #                                        in-kernel          hoisted: bc_ref [C, Hr]
    zc = jnp.dot(z.astype(bf16), rw1z_ref[...], preferred_element_type=f32)            # [TB, Hr]
    h1 = jnp.maximum(zc[:, None, :] + bc_ref[...][None, :, :], 0.0)                    # [TB, C, Hr]
    h1 = h1.reshape(TB * C, Hr)
    h2 = jnp.dot(h1.astype(bf16), rw2_ref[...], preferred_element_type=f32) + rb2_ref[...]
    h2 = jnp.maximum(h2, 0.0)                                                          # [TB*C, Hr]
    raw6 = jnp.dot(h2.astype(bf16), rw3_ref[...], preferred_element_type=f32) + rb3_ref[...]  # [TB*C, 6]

    # --- 6D -> SO(3) Gram-Schmidt epilogue (EUP rsqrt; f32) --------------------------------
    a1 = raw6[:, 0:3]
    a2 = raw6[:, 3:6]
    inv1 = jax.lax.rsqrt(jnp.maximum(jnp.sum(a1 * a1, axis=-1, keepdims=True), 1e-12))
    b1v = a1 * inv1
    a2p = a2 - jnp.sum(b1v * a2, axis=-1, keepdims=True) * b1v
    inv2 = jax.lax.rsqrt(jnp.maximum(jnp.sum(a2p * a2p, axis=-1, keepdims=True), 1e-12))
    b2v = a2p * inv2
    b1x, b1y, b1z = b1v[:, 0:1], b1v[:, 1:2], b1v[:, 2:3]
    b2x, b2y, b2z = b2v[:, 0:1], b2v[:, 1:2], b2v[:, 2:3]
    b3v = jnp.concatenate([b1y * b2z - b1z * b2y,
                           b1z * b2x - b1x * b2z,
                           b1x * b2y - b1y * b2x], axis=-1)
    r_flat = jnp.concatenate([b1v, b2v, b3v], axis=-1)                                 # [TB*C, 9]

    # Lane-dense (128-wide) store; with batching the slab is TB*C rows per step.
    pad = jnp.zeros((TB * C, out_ref.shape[-1] - r_flat.shape[-1]), f32)
    out_ref[...] = jnp.concatenate([r_flat, pad], axis=-1).reshape(TB, C, out_ref.shape[-1])


# --------------------------------------------------------------------------------------
# Plain-JAX glue: parameter init, UnitCell candidates.
# --------------------------------------------------------------------------------------
def init_linear(key, fan_in, fan_out):
    kw, kb = jax.random.split(key)
    bound = 1.0 / jnp.sqrt(jnp.float32(fan_in))
    w = jax.random.uniform(kw, (fan_in, fan_out), jnp.float32, -bound, bound)
    b = jax.random.uniform(kb, (1, fan_out), jnp.float32, -bound, bound)
    return w, b


def init_params(key, latent_dim=64, encoder_hidden=128, rotation_hidden=128):
    ks = jax.random.split(key, 7)
    p = {}
    p["enc_w1"], p["enc_b1"] = init_linear(ks[0], 3, encoder_hidden)
    p["enc_w2"], p["enc_b2"] = init_linear(ks[1], encoder_hidden, encoder_hidden)
    p["enc_w3"], p["enc_b3"] = init_linear(ks[2], encoder_hidden, encoder_hidden)
    p["enc_w4"], p["enc_b4"] = init_linear(ks[3], encoder_hidden, latent_dim)
    p["rot_w1"], p["rot_b1"] = init_linear(ks[4], latent_dim + 9, rotation_hidden)
    p["rot_w2"], p["rot_b2"] = init_linear(ks[5], rotation_hidden, rotation_hidden)
    p["rot_w3"], p["rot_b3"] = init_linear(ks[6], rotation_hidden, 6)
    return p


def unit_cell(num_samples, key):
    """UnitCell(): C candidate reciprocal basis matrices [C, 3, 3] from sampled cell params."""
    mu = jnp.array([3.0, 4.0, 5.0, 90.0, 90.0, 90.0], jnp.float32)       # a,b,c,alpha,beta,gamma
    diag_s = jnp.array([0.05, 0.05, 0.05, 1.0, 1.0, 1.0], jnp.float32)
    eps = jax.random.normal(key, (num_samples, 6), jnp.float32)
    theta = mu[None, :] + eps * jnp.sqrt(diag_s)[None, :]
    a, b, c = theta[:, 0], theta[:, 1], theta[:, 2]
    al, be, ga = (jnp.deg2rad(theta[:, 3]), jnp.deg2rad(theta[:, 4]), jnp.deg2rad(theta[:, 5]))
    zero = jnp.zeros_like(a)
    v1 = jnp.stack([a, zero, zero], axis=-1)
    v2 = jnp.stack([b * jnp.cos(ga), b * jnp.sin(ga), zero], axis=-1)
    cx = c * jnp.cos(be)
    cy = c * (jnp.cos(al) - jnp.cos(be) * jnp.cos(ga)) / jnp.sin(ga)
    cz = jnp.sqrt(jnp.maximum(c * c - cx * cx - cy * cy, 1e-8))
    v3 = jnp.stack([cx, cy, cz], axis=-1)
    A = jnp.stack([v1, v2, v3], axis=1)                                  # direct cell [C, 3, 3]
    B_candidates = jnp.transpose(jnp.linalg.inv(A), (0, 2, 1))           # reciprocal basis
    return B_candidates


def _choose_tb(B, N):
    """Batch tile: target ~256 phi-MLP rows per step (fills a v6e/v7x MXU pass,
    >=2 full 128-row passes on v5e) but keep >=2 grid steps for v7x megacore when B >= 2."""
    tb = max(1, 256 // max(N, 1))
    if tb >= B:
        tb = max(1, (B + 1) // 2) if B >= 2 else 1
    return int(tb)


# --------------------------------------------------------------------------------------
# Forward pass
# --------------------------------------------------------------------------------------
@partial(jax.jit, static_argnames=("num_theta_samples",))
def qtor_forward(params, Q_batch, mask, theta_key, num_theta_samples=2):
    B, N, _ = Q_batch.shape
    H = params["enc_w1"].shape[1]
    L = params["enc_w4"].shape[1]
    Hr = params["rot_w1"].shape[1]
    f32, bf16 = jnp.float32, jnp.bfloat16

    # UnitCell candidates (tiny, plain JAX; outside the kernel).
    B_candidates = unit_cell(num_theta_samples, theta_key)               # [C, 3, 3]
    C = B_candidates.shape[0]
    B_flat = B_candidates.reshape(C, 9).astype(f32)

    # Hoisted, batch-invariant candidate projection (f32):
    #   bc = B_flat @ rot_w1[L:] + rot_b1    -> [C, Hr]
    rw1 = params["rot_w1"].astype(f32)
    bc = B_flat @ rw1[L:, :] + params["rot_b1"].astype(f32)

    # Per-batch masked-mean pooling weights, [B, N, 1].
    maskf = mask.astype(f32)
    counts = jnp.clip(jnp.sum(maskf, axis=1, keepdims=True), 1.0)
    pool_rows = (maskf / counts)[..., None]

    q = Q_batch.astype(f32)

    # Batch tiling (pad B to a multiple of TB; padded rows sliced off below).
    TB = _choose_tb(B, N)
    G = pl.cdiv(B, TB)
    B_pad = G * TB
    if B_pad != B:
        q = jnp.pad(q, ((0, B_pad - B), (0, 0), (0, 0)))
        pool_rows = jnp.pad(pool_rows, ((0, B_pad - B), (0, 0), (0, 0)))

    args = (
        q, pool_rows, bc,
        params["enc_w1"].astype(f32), params["enc_b1"].astype(f32),
        params["enc_w2"].astype(bf16), params["enc_b2"].astype(f32),
        params["enc_w3"].astype(bf16), params["enc_b3"].astype(f32),
        params["enc_w4"].astype(bf16), params["enc_b4"].astype(f32),
        rw1[:L, :].astype(bf16),                                        # rot W1 (z part only)
        params["rot_w2"].astype(bf16), params["rot_b2"].astype(f32),
        params["rot_w3"].astype(bf16), params["rot_b3"].astype(f32),
    )

    def full_block(a):
        nd = a.ndim
        return pl.BlockSpec(a.shape, lambda g, _nd=nd: (0,) * _nd)

    in_specs = [
        pl.BlockSpec((TB, N, 3), lambda g: (g, 0, 0)),        # per-step point tile
        pl.BlockSpec((TB, N, 1), lambda g: (g, 0, 0)),        # per-step pooling weights
    ] + [full_block(a) for a in args[2:]]                     # hoisted bc + weights (reused)

    # Advisory cost estimate so XLA schedules/overlaps the fused call correctly.
    flops = int(2 * B_pad * (N * 3 * H + N * H * H + H * H + H * L + L * Hr)
                + 2 * B_pad * C * (Hr * Hr + Hr * 6) + 40 * B_pad * C)
    bytes_accessed = int(
        4 * (q.size + pool_rows.size + B_pad * C * OUT_LANES)            # streamed per step
        + 2 * (2 * H * H + H * L + L * Hr + Hr * Hr + Hr * 6)            # bf16 weights
        + 4 * (3 * H + 3 * H + L + C * Hr + Hr + 6))                     # f32 biases + bc
    cost = pl.CostEstimate(flops=flops,
                           transcendentals=int(2 * B_pad * C),
                           bytes_accessed=bytes_accessed)

    r_slab = pl.pallas_call(
        qtor_fused_kernel,
        out_shape=jax.ShapeDtypeStruct((B_pad, C, OUT_LANES), f32),
        grid=(G,),
        in_specs=in_specs,
        out_specs=pl.BlockSpec((TB, C, OUT_LANES), lambda g: (g, 0, 0)),
        compiler_params=pltpu.CompilerParams(
            dimension_semantics=("parallel",)),                # megacore sharding on v7x
        cost_estimate=cost,
    )(*args)

    R = r_slab[:B, :, :9].reshape(B, C, 3, 3)
    return R


if __name__ == "__main__":
    key = jax.random.PRNGKey(0)
    k_param, k_q, k_mask, k_theta = jax.random.split(key, 4)

    B, N, C = 2, 8, 2
    LATENT, ENC_H, ROT_H = 64, 128, 128     # module defaults (lane-dense hidden widths)

    params = init_params(k_param, latent_dim=LATENT, encoder_hidden=ENC_H,
                         rotation_hidden=ROT_H)
    Q_batch = jax.random.normal(k_q, (B, N, 3), jnp.float32)
    mask = (jax.random.uniform(k_mask, (B, N)) > 0.25).astype(jnp.float32)

    R = qtor_forward(params, Q_batch, mask, k_theta, num_theta_samples=C)
    R = jax.block_until_ready(R)

    assert R.shape == (B, C, 3, 3), R.shape
    assert bool(jnp.all(jnp.isfinite(R)))
    # rotations should be (approximately) orthonormal
    RtR = jnp.einsum("bcij,bcik->bcjk", R, R)
    assert bool(jnp.all(jnp.abs(RtR - jnp.eye(3)) < 1e-4))
    print("KERNEL_OK")
</pallas_src>

<mosaic_0001>
module attributes {stable_mosaic.version = 11 : i64} {
  func.func @qtor_fused_kernel(%arg0: i32, %arg1: memref<1x8x3xf32, #tpu.memory_space<vmem>>, %arg2: memref<1x8x1xf32, #tpu.memory_space<vmem>>, %arg3: memref<2x128xf32, #tpu.memory_space<vmem>>, %arg4: memref<3x128xf32, #tpu.memory_space<vmem>>, %arg5: memref<1x128xf32, #tpu.memory_space<vmem>>, %arg6: memref<128x128xbf16, #tpu.memory_space<vmem>>, %arg7: memref<1x128xf32, #tpu.memory_space<vmem>>, %arg8: memref<128x128xbf16, #tpu.memory_space<vmem>>, %arg9: memref<1x128xf32, #tpu.memory_space<vmem>>, %arg10: memref<128x64xbf16, #tpu.memory_space<vmem>>, %arg11: memref<1x64xf32, #tpu.memory_space<vmem>>, %arg12: memref<64x128xbf16, #tpu.memory_space<vmem>>, %arg13: memref<128x128xbf16, #tpu.memory_space<vmem>>, %arg14: memref<1x128xf32, #tpu.memory_space<vmem>>, %arg15: memref<128x6xbf16, #tpu.memory_space<vmem>>, %arg16: memref<1x6xf32, #tpu.memory_space<vmem>>, %arg17: memref<1x2x128xf32, #tpu.memory_space<vmem>>) attributes {dimension_semantics = [#tpu.dimension_semantics<parallel>], iteration_bounds = array<i64: 2>, scalar_prefetch = 0 : i64, scratch_operands = 0 : i64, tpu.core_type = #tpu.core_type<tc>, window_params = [{transform_indices = @transform_0, window_bounds = array<i64: 1, 8, 3>}, {transform_indices = @transform_1, window_bounds = array<i64: 1, 8, 1>}, {pipeline_mode = #tpu.pipeline_mode<synchronous>, transform_indices = @transform_2, window_bounds = array<i64: 2, 128>}, {pipeline_mode = #tpu.pipeline_mode<synchronous>, transform_indices = @transform_3, window_bounds = array<i64: 3, 128>}, {pipeline_mode = #tpu.pipeline_mode<synchronous>, transform_indices = @transform_4, window_bounds = array<i64: 1, 128>}, {pipeline_mode = #tpu.pipeline_mode<synchronous>, transform_indices = @transform_5, window_bounds = array<i64: 128, 128>}, {pipeline_mode = #tpu.pipeline_mode<synchronous>, transform_indices = @transform_6, window_bounds = array<i64: 1, 128>}, {pipeline_mode = #tpu.pipeline_mode<synchronous>, transform_indices = @transform_7, window_bounds = array<i64: 128, 128>}, {pipeline_mode = #tpu.pipeline_mode<synchronous>, transform_indices = @transform_8, window_bounds = array<i64: 1, 128>}, {pipeline_mode = #tpu.pipeline_mode<synchronous>, transform_indices = @transform_9, window_bounds = array<i64: 128, 64>}, {pipeline_mode = #tpu.pipeline_mode<synchronous>, transform_indices = @transform_10, window_bounds = array<i64: 1, 64>}, {pipeline_mode = #tpu.pipeline_mode<synchronous>, transform_indices = @transform_11, window_bounds = array<i64: 64, 128>}, {pipeline_mode = #tpu.pipeline_mode<synchronous>, transform_indices = @transform_12, window_bounds = array<i64: 128, 128>}, {pipeline_mode = #tpu.pipeline_mode<synchronous>, transform_indices = @transform_13, window_bounds = array<i64: 1, 128>}, {pipeline_mode = #tpu.pipeline_mode<synchronous>, transform_indices = @transform_14, window_bounds = array<i64: 128, 6>}, {pipeline_mode = #tpu.pipeline_mode<synchronous>, transform_indices = @transform_15, window_bounds = array<i64: 1, 6>}, {transform_indices = @transform_16, window_bounds = array<i64: 1, 2, 128>}]} {
    %c0 = arith.constant 0 : index
    %c0_0 = arith.constant 0 : index
    %c0_1 = arith.constant 0 : index
    %0 = vector.load %arg1[%c0, %c0_0, %c0_1] : memref<1x8x3xf32, #tpu.memory_space<vmem>>, vector<1x8x3xf32>
    %1 = vector.shape_cast %0 : vector<1x8x3xf32> to vector<8x3xf32>
    %c0_2 = arith.constant 0 : index
    %c0_3 = arith.constant 0 : index
    %2 = vector.load %arg4[%c0_2, %c0_3] : memref<3x128xf32, #tpu.memory_space<vmem>>, vector<3x128xf32>
    %3 = vector.extract_strided_slice %1 {offsets = [0, 0], sizes = [8, 1], strides = [1, 1]} : vector<8x3xf32> to vector<8x1xf32>
    %4 = vector.extract_strided_slice %2 {offsets = [0, 0], sizes = [1, 128], strides = [1, 1]} : vector<3x128xf32> to vector<1x128xf32>
    %5 = vector.broadcast %3 : vector<8x1xf32> to vector<8x128xf32>
    %6 = vector.broadcast %4 : vector<1x128xf32> to vector<8x128xf32>
    %7 = arith.mulf %5, %6 : vector<8x128xf32>
    %8 = vector.extract_strided_slice %1 {offsets = [0, 1], sizes = [8, 1], strides = [1, 1]} : vector<8x3xf32> to vector<8x1xf32>
    %9 = vector.extract_strided_slice %2 {offsets = [1, 0], sizes = [1, 128], strides = [1, 1]} : vector<3x128xf32> to vector<1x128xf32>
    %10 = vector.broadcast %8 : vector<8x1xf32> to vector<8x128xf32>
    %11 = vector.broadcast %9 : vector<1x128xf32> to vector<8x128xf32>
    %12 = arith.mulf %10, %11 : vector<8x128xf32>
    %13 = arith.addf %7, %12 : vector<8x128xf32>
    %14 = vector.extract_strided_slice %1 {offsets = [0, 2], sizes = [8, 1], strides = [1, 1]} : vector<8x3xf32> to vector<8x1xf32>
    %15 = vector.extract_strided_slice %2 {offsets = [2, 0], sizes = [1, 128], strides = [1, 1]} : vector<3x128xf32> to vector<1x128xf32>
    %16 = vector.broadcast %14 : vector<8x1xf32> to vector<8x128xf32>
    %17 = vector.broadcast %15 : vector<1x128xf32> to vector<8x128xf32>
    %18 = arith.mulf %16, %17 : vector<8x128xf32>
    %19 = arith.addf %13, %18 : vector<8x128xf32>
    %c0_4 = arith.constant 0 : index
    %c0_5 = arith.constant 0 : index
    %20 = vector.load %arg5[%c0_4, %c0_5] : memref<1x128xf32, #tpu.memory_space<vmem>>, vector<1x128xf32>
    %21 = vector.broadcast %20 : vector<1x128xf32> to vector<8x128xf32>
    %22 = arith.addf %19, %21 : vector<8x128xf32>
    %cst = arith.constant 0.000000e+00 : f32
    %23 = vector.broadcast %cst : f32 to vector<8x128xf32>
    %24 = arith.maximumf %22, %23 : vector<8x128xf32>
    %25 = arith.truncf %24 : vector<8x128xf32> to vector<8x128xbf16>
    %c0_6 = arith.constant 0 : index
    %c0_7 = arith.constant 0 : index
    %26 = vector.load %arg6[%c0_6, %c0_7] : memref<128x128xbf16, #tpu.memory_space<vmem>>, vector<128x128xbf16>
    %cst_8 = arith.constant dense<0.000000e+00> : vector<8x128xf32>
    %27 = tpu.matmul %25, %26, %cst_8 {dimension_numbers = #tpu.dot_dimension_numbers<[1], [0], [0], [1], [0, 0, 1, 1], [], []>} : vector<8x128xbf16>, vector<128x128xbf16>, vector<8x128xf32> -> vector<8x128xf32>
    %c0_9 = arith.constant 0 : index
    %c0_10 = arith.constant 0 : index
    %28 = vector.load %arg7[%c0_9, %c0_10] : memref<1x128xf32, #tpu.memory_space<vmem>>, vector<1x128xf32>
    %29 = vector.broadcast %28 : vector<1x128xf32> to vector<8x128xf32>
    %30 = arith.addf %27, %29 : vector<8x128xf32>
    %cst_11 = arith.constant 0.000000e+00 : f32
    %31 = vector.broadcast %cst_11 : f32 to vector<8x128xf32>
    %32 = arith.maximumf %30, %31 : vector<8x128xf32>
    %33 = vector.shape_cast %32 : vector<8x128xf32> to vector<1x8x128xf32>
    %c0_12 = arith.constant 0 : index
    %c0_13 = arith.constant 0 : index
    %c0_14 = arith.constant 0 : index
    %34 = vector.load %arg2[%c0_12, %c0_13, %c0_14] : memref<1x8x1xf32, #tpu.memory_space<vmem>>, vector<1x8x1xf32>
    %35 = vector.broadcast %34 : vector<1x8x1xf32> to vector<1x8x128xf32>
    %36 = arith.mulf %33, %35 : vector<1x8x128xf32>
    %cst_15 = arith.constant dense<0.000000e+00> : vector<1x128xf32>
    %37 = vector.multi_reduction <add>, %36, %cst_15 [1] : vector<1x8x128xf32> to vector<1x128xf32>
    %38 = arith.truncf %37 : vector<1x128xf32> to vector<1x128xbf16>
    %c0_16 = arith.constant 0 : index
    %c0_17 = arith.constant 0 : index
    %39 = vector.load %arg8[%c0_16, %c0_17] : memref<128x128xbf16, #tpu.memory_space<vmem>>, vector<128x128xbf16>
    %cst_18 = arith.constant dense<0.000000e+00> : vector<1x128xf32>
    %40 = tpu.matmul %38, %39, %cst_18 {dimension_numbers = #tpu.dot_dimension_numbers<[1], [0], [0], [1], [0, 0, 1, 1], [], []>} : vector<1x128xbf16>, vector<128x128xbf16>, vector<1x128xf32> -> vector<1x128xf32>
    %c0_19 = arith.constant 0 : index
    %c0_20 = arith.constant 0 : index
    %41 = vector.load %arg9[%c0_19, %c0_20] : memref<1x128xf32, #tpu.memory_space<vmem>>, vector<1x128xf32>
    %42 = arith.addf %40, %41 : vector<1x128xf32>
    %cst_21 = arith.constant 0.000000e+00 : f32
    %43 = vector.broadcast %cst_21 : f32 to vector<1x128xf32>
    %44 = arith.maximumf %42, %43 : vector<1x128xf32>
    %45 = arith.truncf %44 : vector<1x128xf32> to vector<1x128xbf16>
    %c0_22 = arith.constant 0 : index
    %c0_23 = arith.constant 0 : index
    %46 = vector.load %arg10[%c0_22, %c0_23] : memref<128x64xbf16, #tpu.memory_space<vmem>>, vector<128x64xbf16>
    %cst_24 = arith.constant dense<0.000000e+00> : vector<1x64xf32>
    %47 = tpu.matmul %45, %46, %cst_24 {dimension_numbers = #tpu.dot_dimension_numbers<[1], [0], [0], [1], [0, 0, 1, 1], [], []>} : vector<1x128xbf16>, vector<128x64xbf16>, vector<1x64xf32> -> vector<1x64xf32>
    %c0_25 = arith.constant 0 : index
    %c0_26 = arith.constant 0 : index
    %48 = vector.load %arg11[%c0_25, %c0_26] : memref<1x64xf32, #tpu.memory_space<vmem>>, vector<1x64xf32>
    %49 = arith.addf %47, %48 : vector<1x64xf32>
    %50 = arith.truncf %49 : vector<1x64xf32> to vector<1x64xbf16>
    %c0_27 = arith.constant 0 : index
    %c0_28 = arith.constant 0 : index
    %51 = vector.load %arg12[%c0_27, %c0_28] : memref<64x128xbf16, #tpu.memory_space<vmem>>, vector<64x128xbf16>
    %cst_29 = arith.constant dense<0.000000e+00> : vector<1x128xf32>
    %52 = tpu.matmul %50, %51, %cst_29 {dimension_numbers = #tpu.dot_dimension_numbers<[1], [0], [0], [1], [0, 0, 1, 1], [], []>} : vector<1x64xbf16>, vector<64x128xbf16>, vector<1x128xf32> -> vector<1x128xf32>
    %53 = vector.shape_cast %52 : vector<1x128xf32> to vector<1x1x128xf32>
    %c0_30 = arith.constant 0 : index
    %c0_31 = arith.constant 0 : index
    %54 = vector.load %arg3[%c0_30, %c0_31] : memref<2x128xf32, #tpu.memory_space<vmem>>, vector<2x128xf32>
    %55 = vector.shape_cast %54 : vector<2x128xf32> to vector<1x2x128xf32>
    %56 = vector.broadcast %53 : vector<1x1x128xf32> to vector<1x2x128xf32>
    %57 = arith.addf %56, %55 : vector<1x2x128xf32>
    %cst_32 = arith.constant 0.000000e+00 : f32
    %58 = vector.broadcast %cst_32 : f32 to vector<1x2x128xf32>
    %59 = arith.maximumf %57, %58 : vector<1x2x128xf32>
    %60 = vector.shape_cast %59 : vector<1x2x128xf32> to vector<2x128xf32>
    %61 = arith.truncf %60 : vector<2x128xf32> to vector<2x128xbf16>
    %c0_33 = arith.constant 0 : index
    %c0_34 = arith.constant 0 : index
    %62 = vector.load %arg13[%c0_33, %c0_34] : memref<128x128xbf16, #tpu.memory_space<vmem>>, vector<128x128xbf16>
    %cst_35 = arith.constant dense<0.000000e+00> : vector<2x128xf32>
    %63 = tpu.matmul %61, %62, %cst_35 {dimension_numbers = #tpu.dot_dimension_numbers<[1], [0], [0], [1], [0, 0, 1, 1], [], []>} : vector<2x128xbf16>, vector<128x128xbf16>, vector<2x128xf32> -> vector<2x128xf32>
    %c0_36 = arith.constant 0 : index
    %c0_37 = arith.constant 0 : index
    %64 = vector.load %arg14[%c0_36, %c0_37] : memref<1x128xf32, #tpu.memory_space<vmem>>, vector<1x128xf32>
    %65 = vector.broadcast %64 : vector<1x128xf32> to vector<2x128xf32>
    %66 = arith.addf %63, %65 : vector<2x128xf32>
    %cst_38 = arith.constant 0.000000e+00 : f32
    %67 = vector.broadcast %cst_38 : f32 to vector<2x128xf32>
    %68 = arith.maximumf %66, %67 : vector<2x128xf32>
    %69 = arith.truncf %68 : vector<2x128xf32> to vector<2x128xbf16>
    %c0_39 = arith.constant 0 : index
    %c0_40 = arith.constant 0 : index
    %70 = vector.load %arg15[%c0_39, %c0_40] : memref<128x6xbf16, #tpu.memory_space<vmem>>, vector<128x6xbf16>
    %cst_41 = arith.constant dense<0.000000e+00> : vector<2x6xf32>
    %71 = tpu.matmul %69, %70, %cst_41 {dimension_numbers = #tpu.dot_dimension_numbers<[1], [0], [0], [1], [0, 0, 1, 1], [], []>} : vector<2x128xbf16>, vector<128x6xbf16>, vector<2x6xf32> -> vector<2x6xf32>
    %c0_42 = arith.constant 0 : index
    %c0_43 = arith.constant 0 : index
    %72 = vector.load %arg16[%c0_42, %c0_43] : memref<1x6xf32, #tpu.memory_space<vmem>>, vector<1x6xf32>
    %73 = vector.broadcast %72 : vector<1x6xf32> to vector<2x6xf32>
    %74 = arith.addf %71, %73 : vector<2x6xf32>
    %75 = vector.extract_strided_slice %74 {offsets = [0, 0], sizes = [2, 3], strides = [1, 1]} : vector<2x6xf32> to vector<2x3xf32>
    %76 = vector.extract_strided_slice %74 {offsets = [0, 3], sizes = [2, 3], strides = [1, 1]} : vector<2x6xf32> to vector<2x3xf32>
    %77 = arith.mulf %75, %75 : vector<2x3xf32>
    %cst_44 = arith.constant dense<0.000000e+00> : vector<2xf32>
    %78 = vector.multi_reduction <add>, %77, %cst_44 [1] : vector<2x3xf32> to vector<2xf32>
    %79 = vector.shape_cast %78 : vector<2xf32> to vector<2x1xf32>
    %cst_45 = arith.constant 9.99999996E-13 : f32
    %80 = vector.broadcast %cst_45 : f32 to vector<2x1xf32>
    %81 = arith.maximumf %79, %80 : vector<2x1xf32>
    %82 = math.rsqrt %81 : vector<2x1xf32>
    %83 = vector.broadcast %82 : vector<2x1xf32> to vector<2x3xf32>
    %84 = arith.mulf %75, %83 : vector<2x3xf32>
    %85 = arith.mulf %84, %76 : vector<2x3xf32>
    %cst_46 = arith.constant dense<0.000000e+00> : vector<2xf32>
    %86 = vector.multi_reduction <add>, %85, %cst_46 [1] : vector<2x3xf32> to vector<2xf32>
    %87 = vector.shape_cast %86 : vector<2xf32> to vector<2x1xf32>
    %88 = vector.broadcast %87 : vector<2x1xf32> to vector<2x3xf32>
    %89 = arith.mulf %88, %84 : vector<2x3xf32>
    %90 = arith.subf %76, %89 : vector<2x3xf32>
    %91 = arith.mulf %90, %90 : vector<2x3xf32>
    %cst_47 = arith.constant dense<0.000000e+00> : vector<2xf32>
    %92 = vector.multi_reduction <add>, %91, %cst_47 [1] : vector<2x3xf32> to vector<2xf32>
    %93 = vector.shape_cast %92 : vector<2xf32> to vector<2x1xf32>
    %cst_48 = arith.constant 9.99999996E-13 : f32
    %94 = vector.broadcast %cst_48 : f32 to vector<2x1xf32>
    %95 = arith.maximumf %93, %94 : vector<2x1xf32>
    %96 = math.rsqrt %95 : vector<2x1xf32>
    %97 = vector.broadcast %96 : vector<2x1xf32> to vector<2x3xf32>
    %98 = arith.mulf %90, %97 : vector<2x3xf32>
    %99 = vector.extract_strided_slice %84 {offsets = [0, 0], sizes = [2, 1], strides = [1, 1]} : vector<2x3xf32> to vector<2x1xf32>
    %100 = vector.extract_strided_slice %84 {offsets = [0, 1], sizes = [2, 1], strides = [1, 1]} : vector<2x3xf32> to vector<2x1xf32>
    %101 = vector.extract_strided_slice %84 {offsets = [0, 2], sizes = [2, 1], strides = [1, 1]} : vector<2x3xf32> to vector<2x1xf32>
    %102 = vector.extract_strided_slice %98 {offsets = [0, 0], sizes = [2, 1], strides = [1, 1]} : vector<2x3xf32> to vector<2x1xf32>
    %103 = vector.extract_strided_slice %98 {offsets = [0, 1], sizes = [2, 1], strides = [1, 1]} : vector<2x3xf32> to vector<2x1xf32>
    %104 = vector.extract_strided_slice %98 {offsets = [0, 2], sizes = [2, 1], strides = [1, 1]} : vector<2x3xf32> to vector<2x1xf32>
    %105 = arith.mulf %100, %104 : vector<2x1xf32>
    %106 = arith.mulf %101, %103 : vector<2x1xf32>
    %107 = arith.subf %105, %106 : vector<2x1xf32>
    %108 = arith.mulf %101, %102 : vector<2x1xf32>
    %109 = arith.mulf %99, %104 : vector<2x1xf32>
    %110 = arith.subf %108, %109 : vector<2x1xf32>
    %111 = arith.mulf %99, %103 : vector<2x1xf32>
    %112 = arith.mulf %100, %102 : vector<2x1xf32>
    %113 = arith.subf %111, %112 : vector<2x1xf32>
    %114 = tpu.concatenate %107, %110, %113 in 1 : vector<2x1xf32>, vector<2x1xf32>, vector<2x1xf32> -> vector<2x3xf32>
    %115 = tpu.concatenate %84, %98, %114 in 1 : vector<2x3xf32>, vector<2x3xf32>, vector<2x3xf32> -> vector<2x9xf32>
    %cst_49 = arith.constant 0.000000e+00 : f32
    %116 = vector.broadcast %cst_49 : f32 to vector<2x119xf32>
    %117 = tpu.concatenate %115, %116 in 1 : vector<2x9xf32>, vector<2x119xf32> -> vector<2x128xf32>
    %118 = vector.shape_cast %117 : vector<2x128xf32> to vector<1x2x128xf32>
    %c0_50 = arith.constant 0 : index
    %c0_51 = arith.constant 0 : index
    %c0_52 = arith.constant 0 : index
    %119 = vector.load %arg17[%c0_50, %c0_51, %c0_52] : memref<1x2x128xf32, #tpu.memory_space<vmem>>, vector<1x2x128xf32>
    tpu.vector_store %arg17[%c0_50, %c0_51, %c0_52], %118 {strides = array<i32>} : memref<1x2x128xf32, #tpu.memory_space<vmem>>, vector<1x2x128xf32>,
    return
  }
  func.func @transform_0(%arg0: i32) -> (i32, i32, i32) {
    %c0_i32 = arith.constant 0 : i32
    %c0_i32_0 = arith.constant 0 : i32
    %c0_i32_1 = arith.constant 0 : i32
    return %arg0, %c0_i32, %c0_i32_0 : i32, i32, i32
  }
  func.func @transform_1(%arg0: i32) -> (i32, i32, i32) {
    %c0_i32 = arith.constant 0 : i32
    %c0_i32_0 = arith.constant 0 : i32
    %c0_i32_1 = arith.constant 0 : i32
    return %arg0, %c0_i32, %c0_i32_0 : i32, i32, i32
  }
  func.func @transform_2(%arg0: i32) -> (i32, i32) {
    %c0_i32 = arith.constant 0 : i32
    %c0_i32_0 = arith.constant 0 : i32
    %c0_i32_1 = arith.constant 0 : i32
    return %c0_i32, %c0_i32_0 : i32, i32
  }
  func.func @transform_3(%arg0: i32) -> (i32, i32) {
    %c0_i32 = arith.constant 0 : i32
    %c0_i32_0 = arith.constant 0 : i32
    %c0_i32_1 = arith.constant 0 : i32
    return %c0_i32, %c0_i32_0 : i32, i32
  }
  func.func @transform_4(%arg0: i32) -> (i32, i32) {
    %c0_i32 = arith.constant 0 : i32
    %c0_i32_0 = arith.constant 0 : i32
    %c0_i32_1 = arith.constant 0 : i32
    return %c0_i32, %c0_i32_0 : i32, i32
  }
  func.func @transform_5(%arg0: i32) -> (i32, i32) {
    %c0_i32 = arith.constant 0 : i32
    %c0_i32_0 = arith.constant 0 : i32
    %c0_i32_1 = arith.constant 0 : i32
    return %c0_i32, %c0_i32_0 : i32, i32
  }
  func.func @transform_6(%arg0: i32) -> (i32, i32) {
    %c0_i32 = arith.constant 0 : i32
    %c0_i32_0 = arith.constant 0 : i32
    %c0_i32_1 = arith.constant 0 : i32
    return %c0_i32, %c0_i32_0 : i32, i32
  }
  func.func @transform_7(%arg0: i32) -> (i32, i32) {
    %c0_i32 = arith.constant 0 : i32
    %c0_i32_0 = arith.constant 0 : i32
    %c0_i32_1 = arith.constant 0 : i32
    return %c0_i32, %c0_i32_0 : i32, i32
  }
  func.func @transform_8(%arg0: i32) -> (i32, i32) {
    %c0_i32 = arith.constant 0 : i32
    %c0_i32_0 = arith.constant 0 : i32
    %c0_i32_1 = arith.constant 0 : i32
    return %c0_i32, %c0_i32_0 : i32, i32
  }
  func.func @transform_9(%arg0: i32) -> (i32, i32) {
    %c0_i32 = arith.constant 0 : i32
    %c0_i32_0 = arith.constant 0 : i32
    %c0_i32_1 = arith.constant 0 : i32
    return %c0_i32, %c0_i32_0 : i32, i32
  }
  func.func @transform_10(%arg0: i32) -> (i32, i32) {
    %c0_i32 = arith.constant 0 : i32
    %c0_i32_0 = arith.constant 0 : i32
    %c0_i32_1 = arith.constant 0 : i32
    return %c0_i32, %c0_i32_0 : i32, i32
  }
  func.func @transform_11(%arg0: i32) -> (i32, i32) {
    %c0_i32 = arith.constant 0 : i32
    %c0_i32_0 = arith.constant 0 : i32
    %c0_i32_1 = arith.constant 0 : i32
    return %c0_i32, %c0_i32_0 : i32, i32
  }
  func.func @transform_12(%arg0: i32) -> (i32, i32) {
    %c0_i32 = arith.constant 0 : i32
    %c0_i32_0 = arith.constant 0 : i32
    %c0_i32_1 = arith.constant 0 : i32
    return %c0_i32, %c0_i32_0 : i32, i32
  }
  func.func @transform_13(%arg0: i32) -> (i32, i32) {
    %c0_i32 = arith.constant 0 : i32
    %c0_i32_0 = arith.constant 0 : i32
    %c0_i32_1 = arith.constant 0 : i32
    return %c0_i32, %c0_i32_0 : i32, i32
  }
  func.func @transform_14(%arg0: i32) -> (i32, i32) {
    %c0_i32 = arith.constant 0 : i32
    %c0_i32_0 = arith.constant 0 : i32
    %c0_i32_1 = arith.constant 0 : i32
    return %c0_i32, %c0_i32_0 : i32, i32
  }
  func.func @transform_15(%arg0: i32) -> (i32, i32) {
    %c0_i32 = arith.constant 0 : i32
    %c0_i32_0 = arith.constant 0 : i32
    %c0_i32_1 = arith.constant 0 : i32
    return %c0_i32, %c0_i32_0 : i32, i32
  }
  func.func @transform_16(%arg0: i32) -> (i32, i32, i32) {
    %c0_i32 = arith.constant 0 : i32
    %c0_i32_0 = arith.constant 0 : i32
    %c0_i32_1 = arith.constant 0 : i32
    return %arg0, %c0_i32, %c0_i32_0 : i32, i32, i32
  }
}

</mosaic_0001>

<bundles_post_ra>
// kernel: custom-call.11
= control target key start
LH: loop header
LB: loop body
LE: loop exit
PB: predicated region body
PF: predicated region fallthrough
CT: control target
= control target key end

     0   :  { %5 = vsyncpa [#allocation6], 0  ;;  %s909_s0 = inlined_call_operand.vmem [shape: f32[2,3,3], index: 0, kind: input, shape index: {}]   ;;  %s910_s1 = inlined_call_operand.vmem [shape: f32[2,3,3], index: 1, kind: output, shape index: {0}]   ;;  %s911_s2 = inlined_call_operand.hbm [shape: s32[2,3], index: 2, kind: output, shape index: {1}]   ;;  %s912_s3 = inlined_call_operand.vmem [shape: s32[2,3], index: 3, kind: output, shape index: {2}]  }
   0x1   :  { %7 = vsyncpa [#allocation6 + $0x1], 0  ;;  %s726_s12 = smov 0   ;;  %s728_s13 = smov 0  }
   0x2   :  { %s730_s14 = smov 0   ;;  %s732_s15 = smov 0  }
   0x3 LB: > { %s747_s16 = sadd.s32 4294967295, %s698_s15   ;;  %s563_s17 = sadd.s32 4294967294, %s698_s15   ;;  %s698_s15 = sphi %s732_s15, %s920_s15   ;;  %s694_s14 = sphi %s730_s14, %s919_s14   ;;  %s690_s13 = sphi %s728_s13, %s918_s13   ;;  %s686_s12 = sphi %s726_s12, %s917_s12  }
   0x4   : > { %s751_s18 = sadd.s32 1, %s698_s15   ;;  %s17_s19 = sshrl.u32 %s698_s15, 3 }
   0x5   : > { %s18_s20 = sshrl.u32 %s751_s18, 3  ;;  %s22_s21 = sadd.s32 1, %s694_s14 }
   0x6   : > { %s19_s22 = ssub.s32 %s17_s19, %s18_s20  ;;  %p32_p0 = scmp.ne.s32.totalorder %s694_s14, %s690_s13 }
   0x7   : > { %p20_p1 = scmp.eq.s32.totalorder %s19_s22, 0  ;;  %p33_p2 = scmp.eq.s32.totalorder %s747_s16, 1 }
   0x8   : > { %p38_p3 = scmp.ne.s32.totalorder %s690_s13, %s686_s12  ;;  %p39_p4 = scmp.eq.s32.totalorder %s563_s17, 1 }
   0x9   : > { %s762_s23 = scalar_select %p20_p1, %s694_s14, %s22_s21  }
   0xa   : > { %p764_p5 = por %p33_p2, %p32_p0  ;;  %p768_p6 = por %p39_p4, %p38_p3 }
   0xb   : > { %p565_p7 = scmp.ge.s32.totalorder %s698_s15, 2 }
   0xc   : > { %s85_s26 = sand.u32 (!%p565_p7), 1, %s698_s15   ;;  %s567_s27 = sshll.u32 (!%p565_p7), %s698_s15, 2 }
   0xd   : > { %83 = sbr.rel (%p565_p7) target bundleno = 20 (0x14), region = 16  ;;  %s566_s28 = sshll.u32 (!%p565_p7), %s85_s26, 2 }
   0xe   : > { %s89_s4 = scalar_lea.vmem (!%p565_p7), %s909_s0, %s567_s27  ;;  %s87_s5 = scalar_lea.vmem (!%p565_p7), [#allocation1], %s566_s28 }
  0x12   : > { %v106_v0 = vld [vmem:[%s89_s4] sm:$0xf] }
  0x13   : > { %107 = vst [vmem:[%s87_s5] sm:$0xf] %v106_v0 }
  0x14 PF: > { %p568_p8 = scmp.ge.s32.totalorder %s698_s15, 1  ;;  %p124_p9 = scmp.lt.s32.totalorder %s698_s15, 3 }
  0x16   : > { %p125_p10 = pnand %p568_p8, %p124_p9 }
  0x18   : > { %128 = sbr.rel (%p125_p10) target bundleno = 446 (0x1be), region = 50 }
  0x1d   : > { %s135_s6 = sand.u32 1, %s747_s16   ;;  %s146_s7 = sand.u32 1, %s690_s13   ;;  %v169_v1 = vlaneseq  ;;  %v704_v4 = vmov 0  }
  0x1e   : > { %s784_s8 = sshll.u32 %s135_s6, 2  ;;  %s788_s9 = sshll.u32 %s146_s7, 1 }
  0x1f   : > { %v791_v2 = vshrl.u32 %v169_v1, 7  ;;  %s137_s10 = scalar_lea.vmem [#allocation1], %s784_s8  ;;  %s164_s11 = sand.u32 7, %s747_s16  }
  0x20   : > { %v158_v3 = vld [vmem:[%s137_s10] sm:$0xf]  ;;  %s796_s17 = scalar_lea.vmem [#allocation4], %s164_s11  ;;  %s141_s19 = scalar_lea.vmem [#allocation3], %s784_s8 }
  0x21   : > { %159 = vst [vmem:[#allocation0] sm:$0xf] %v158_v3  ;;  %173 = vst [vmem:[#allocation9] sm:$0xff] %v791_v2  ;;  %s148_s20 = scalar_lea.vmem [#allocation5], %s788_s9  ;;  %s154_s21 = scalar_lea.vmem [#allocation8], %s788_s9 }
  0x22   : > { %168 = vst [vmem:[%s796_s17] sm:$0x1] %v704_v4  ;;  %s802_s22 = scalar_lea.vmem [#allocation7], %s164_s11  ;;  %s804_s26 = smov 0  }
  0x28   : > { %v162_v5 = vld [vmem:[#allocation0] sm:$0xff] }
  0x29   : > { %163 = vst [vmem:[#allocation2] sm:$0xff] %v162_v5 }
  0x2a LB: >> { %vm189_vm0 = vcmp.lt.s32.totalorder %v791_v2, 3  ;;  %v811_v8 = vstv %s702_s26  ;;  %s230_s27 = ssub.s32 128, %s702_s26  ;;  %v236_v38 = vand.u32 127, %v169_v1  ;;  %v239_v40 = vld [vmem:[%s796_s17] ss:$0 sm:$0xff]  ;;  %s242_s28 = scalar_lea.vmem [#allocation2], %s702_s26  ;;  %s702_s26 = sphi %s804_s26, %s179_s26  }
  0x2b   : >> { %vm188_vm1 = vcmp.ge.s32.totalorder %v791_v2, %v811_v8  ;;  %s248_s30 = scalar_lea.vmem [#allocation9], %s702_s26  ;;  %vm268_vm15 = vcmp.gt.s32.totalorder %v791_v2, %v811_v8  ;;  %s179_s26 = sadd.s32 1, %s702_s26  }
  0x2c   : >> { %vm190_vm3 = vmand %vm188_vm1, %vm189_vm0  ;;  %vm260_vm12 = vcmp.gt.s32.totalorder %v236_v38, %v811_v8  ;;  %vm237_vm13 = vcmp.eq.s32.totalorder %v236_v38, %v811_v8  ;;  %v250_v42 = vld [vmem:[%s248_s30] ss:$0 sm:$0xff]  ;;  %p176_p11 = scmp.ge.s32.totalorder %s179_s26, 3  }
  0x2d   : >> { %vm272_vm1 = vmand %vm268_vm15, %vm237_vm13  ;;  %s913_s6 = sshrl.u32 (%p176_p11), %s747_s16, 3  ;;  %s577_s10 = sshll.u32 (%p176_p11), %s747_s16, 2 }
  0x2e   : > { %s578_s11 = sshll.u32 (%p176_p11), %s913_s6, 5 }
  0x30   : >> { %v184_v6 = vld [vmem:[#allocation2] sm:$0xff]  ;;  %v244_v41 = vld [vmem:[%s242_s28] ss:$0 sm:$0xff] }
  0x31   : >> { %v185_v7 = vand.u32 2147483647, %v184_v6 }
  0x33   : >> { %vm573_vm2 = vcmp.gt.f32.partialorder %v185_v7, -inf }
  0x34   : >> { %vm192_vm4 = vmand %vm190_vm3, %vm573_vm2 }
  0x35   : >> { %v193_v9 = vsel %vm192_vm4, %v791_v2, %v811_v8  ;;  %v194_v10 = vsel %vm192_vm4, %v185_v7, -inf }
  0x36   : >> { %v195_v11 = vrot.slane %v194_v10, 1  ;;  %v196_v12 = vrot.slane %v193_v9, 1 }
  0x38   : >> { %vm197_vm5 = vcmp.ge.f32.partialorder %v195_v11, %v194_v10  ;;  %v200_v13 = vrot.slane %v195_v11, 1  ;;  %v201_v14 = vrot.slane %v196_v12, 1 }
  0x39   : >> { %v198_v15 = vsel %vm197_vm5, %v195_v11, %v194_v10  ;;  %v199_v16 = vsel %vm197_vm5, %v196_v12, %v193_v9 }
  0x3a   : >> { %vm202_vm6 = vcmp.ge.f32.partialorder %v200_v13, %v198_v15  ;;  %v205_v17 = vrot.slane %v200_v13, 1  ;;  %v206_v18 = vrot.slane %v201_v14, 1 }
  0x3b   : >> { %v203_v19 = vsel %vm202_vm6, %v200_v13, %v198_v15  ;;  %v204_v20 = vsel %vm202_vm6, %v201_v14, %v199_v16 }
  0x3c   : >> { %vm207_vm7 = vcmp.ge.f32.partialorder %v205_v17, %v203_v19  ;;  %v210_v21 = vrot.slane %v205_v17, 1  ;;  %v211_v22 = vrot.slane %v206_v18, 1 }
  0x3d   : >> { %v208_v23 = vsel %vm207_vm7, %v205_v17, %v203_v19  ;;  %v209_v24 = vsel %vm207_vm7, %v206_v18, %v204_v20 }
  0x3e   : >> { %vm212_vm8 = vcmp.ge.f32.partialorder %v210_v21, %v208_v23  ;;  %v215_v25 = vrot.slane %v210_v21, 1  ;;  %v216_v26 = vrot.slane %v211_v22, 1 }
  0x3f   : >> { %v213_v27 = vsel %vm212_vm8, %v210_v21, %v208_v23  ;;  %v214_v28 = vsel %vm212_vm8, %v211_v22, %v209_v24 }
  0x40   : >> { %vm217_vm9 = vcmp.ge.f32.partialorder %v215_v25, %v213_v27  ;;  %v220_v29 = vrot.slane %v215_v25, 1  ;;  %v221_v30 = vrot.slane %v216_v26, 1 }
  0x41   : >> { %v218_v31 = vsel %vm217_vm9, %v215_v25, %v213_v27  ;;  %v219_v32 = vsel %vm217_vm9, %v216_v26, %v214_v28 }
  0x42   : >> { %vm222_vm10 = vcmp.ge.f32.partialorder %v220_v29, %v218_v31  ;;  %v225_v33 = vrot.slane %v220_v29, 1  ;;  %v226_v34 = vrot.slane %v221_v30, 1 }
  0x43   : >> { %v223_v35 = vsel %vm222_vm10, %v220_v29, %v218_v31  ;;  %v224_v36 = vsel %vm222_vm10, %v221_v30, %v219_v32 }
  0x44   : >> { %vm227_vm11 = vcmp.ge.f32.partialorder %v225_v33, %v223_v35 }
  0x45   : >> { %v229_v37 = vsel %vm227_vm11, %v226_v34, %v224_v36 }
  0x46   : >> { %231 = vrot.lane.b32.xlu0 %v229_v37, %s230_s27  ;;  %s849_s27 = scalar_lea.vmem (%p176_p11), %s910_s1, %s577_s10 }
  0xb8   : >> { %v232_v39 = vpop.permute.xlu0 %231 }
  0xb9   : >> { %582 = vpush %v232_v39 }
  0xea   : >> { %s583_s29 = spop %582 }
  0xeb   : >> { %v238_v43 = vstv %s583_s29  ;;  %s243_s4 = scalar_lea.vmem [#allocation2], %s583_s29  ;;  %s249_s5 = scalar_lea.vmem [#allocation9], %s583_s29 }
  0xec   : >> { %v245_v44 = vld [vmem:[%s243_s4] ss:$0 sm:$0xff]  ;;  %v240_v46 = vsel %vm237_vm13, %v238_v43, %v239_v40 }
  0xed   : >> { %v251_v45 = vld [vmem:[%s249_s5] ss:$0 sm:$0xff]  ;;  %246 = vst [vmem:[%s243_s4] sm:$0x1] %v244_v41  ;;  %vm254_vm14 = vcmp.ne.f32.partialorder %v245_v44, 0.0  ;;  %241 = vst [vmem:[%s796_s17] sm:$0x1] %v240_v46  ;;  %v261_v53 = vsel %vm260_vm12, %v245_v44, 0.0 }
  0xee   : >> { %252 = vst [vmem:[%s249_s5] sm:$0x1] %v250_v42  ;;  %247 = vst [vmem:[%s242_s28] sm:$0x1] %v245_v44  ;;  %s410_s4 = sshll.u32 (%p176_p11), %s148_s20, 4  ;;  %s357_s5 = scalar_lea.sflag (%p176_p11), [#allocation6], %s146_s7  ;;  %s411_s4 = int_to_ptr.vmem [resolvable:$true] %s410_s4 }
  0xef   : >> { %253 = vst [vmem:[%s248_s30] sm:$0x1] %v251_v45  ;;  %vm255_vm0 = vmand %vm237_vm13, %vm254_vm14  ;;  %s854_s30 = scalar_lea.hbm (%p176_p11), %s911_s2, %s578_s11  ;;  %s634_s6 = scalar_lea.vmem (%p176_p11), %s411_s4, 32 }
  0xf0   : >> { %v256_v47 = vsel %vm255_vm0, %v245_v44, 1.0  ;;  %p635_p12 = scmp.ne.s32.totalorder (%p176_p11), %s411_s4, %s634_s6  ;;  %s705_s17 = smov (%p176_p11), [#allocation5]  }
  0xf1   : >> { %v269_v48 = vsel %vm268_vm15, %v256_v47, 1.0  ;;  %s638_s10 = sshll.u32 (%p176_p11), %s705_s17, 4  ;;  %s639_s10 = int_to_ptr.vmem [resolvable:$false] %s638_s10 }
  0xf2   : >> { %632 = vrcp.f32 %v269_v48  ;;  %p636_p13 = pnand (%p176_p11), %p635_p12, %p764_p5  ;;  %s640_s26 = scalar_lea.vmem (%p176_p11), %s639_s10, 64 }
  0xf3   : > { %p641_p1 = scmp.lt.s32.totalorder (%p176_p11), %s411_s4, %s639_s10  ;;  %p642_p2 = scmp.lt.s32.totalorder (%p176_p11), %s640_s26, %s634_s6 }
  0xf4   : > { %v340_v59 = vld [vmem:[#allocation4] sm:$0x3] (%p176_p11)  ;;  %p637_p0 = pneg (%p176_p11), %p636_p13 }
  0xf5   : >> { %v265_v50 = vld [vmem:[#allocation2] sm:$0xff]  ;;  %343 = vst [vmem:[%s148_s20] sm:$0x3] (%p176_p11), %v340_v59  ;;  %p643_p3 = por (%p176_p11), %p642_p2, %p641_p1 }
  0xf6   : > { %v279_v57 = vld [vmem:[#allocation9] sm:$0xff] (%p176_p11) }
  0xf7   : > { %p644_p4 = pnand (%p176_p11), %p643_p3, %p637_p0 }
  0xff   : >> { %v633_v49 = vpop.eup %632 }
 0x100   : >> { %v271_v51 = vmul.f32 %v633_v49, %v265_v50 }
 0x102   : >> { %v273_v52 = vsel %vm272_vm1, %v271_v51, 0.0 }
 0x103   : >> { %274 = vadd.xlane.f32.xlu0 %v273_v52 }
 0x130   : > { %295 = vxpose.xlu0.b32.start.end [1/1] (short) (narrow) (%p176_p11), %v279_v57, 8 }
 0x18c   : >> { %v275_v54 = vpop.xlane.xlu0 %274 }
 0x18d   : >> { %v276_v55 = vmul.f32 %v275_v54, %v261_v53  ;;  %178 = sbr.rel (!%p176_p11) target bundleno = 42 (0x2a), region = 202 }
 0x18f   : >> { %v277_v56 = vsub.f32 %v271_v51, %v276_v55 }
 0x191   : >> { %278 = vst [vmem:[#allocation2] sm:$0xff] %v277_v56 }
 0x198   : > { %v332_v58 = vld [vmem:[#allocation2] sm:$0xf] }
 0x199   : > { %335 = vst [vmem:[%s141_s19] sm:$0xf] %v332_v58 }
 0x1a0   : > { %v383_v60 = vld [vmem:[%s141_s19] sm:$0xf] }
 0x1a1   : > { %647 = shalt.err (!%p644_p4)
}
 0x1a2   : > { %s648_s8 = scalar_lea.hbm %s854_s30, 32  ;;  %s652_s20 = scalar_lea.hbm %s911_s2, 32 }
 0x1a3   : > { %p649_p8 = scmp.ne.s32.totalorder %s854_s30, %s648_s8  ;;  %p653_p11 = scmp.lt.s32.totalorder %s854_s30, %s911_s2 }
 0x1a4   : > { %p654_p12 = scmp.lt.s32.totalorder %s652_s20, %s648_s8 }
 0x1a5   : > { %p650_p9 = pnand %p649_p8, %p764_p5 }
 0x1a6   : > { %p655_p13 = por %p654_p12, %p653_p11 }
 0x1a7   : > { %p651_p10 = pneg %p650_p9 }
 0x1a9   : > { %p656_p0 = pnand %p655_p13, %p651_p10 }
 0x1ab   : > { %659 = shalt.err (!%p656_p0)
}
 0x1ac   : > { %584 = dma.vmem_to_hbm [thread:$0]  (%p764_p5), %s411_s4, 32, %s854_s30, %s357_s5   ;;  %384 = vst [vmem:[%s849_s27] sm:$0xf] %v383_v60  ;;  %v311_v61 = vpop.trf.xlu0 }
 0x1ad   : > { %327 = vst [vmem:[%s802_s22] sm:$0x1] %v311_v61  ;;  %s916_s6 = sshrl.u32 (%p764_p5), %s747_s16, 3 }
 0x1ae   : > { %s579_s29 = sshll.u32 (%p764_p5), %s916_s6, 1 }
 0x1af   : > { %s419_s26 = scalar_lea.vmem (%p764_p5), %s912_s3, %s579_s29 }
 0x1b1   : > { %416 = sbr.rel (!%p764_p5) target bundleno = 446 (0x1be), region = 96 }
 0x1b4   : > { %v348_v62 = vld [vmem:[#allocation7] sm:$0x3] }
 0x1b5   : > { %351 = vst [vmem:[%s154_s21] sm:$0x3] %v348_v62 }
 0x1bc   : > { %v436_v63 = vld [vmem:[%s154_s21] sm:$0x3] }
 0x1bd   : > { %437 = vst [vmem:[%s419_s26] sm:$0x3] %v436_v63 }
 0x1be PF: > { %s465_s22 = sand.u32 1, %s686_s12   ;;  %p587_p5 = pnand %p565_p7, %p768_p6 }
 0x1bf   : > { %s466_s16 = scalar_lea.sflag [#allocation6], %s465_s22 }
 0x1c0   : > { %p588_p1 = pneg %p587_p5 }
 0x1c2   : > { %681 = dma.done.wait (%p588_p1), %s466_s16, 32  }
 0x1c3   : > { %683 = vsyncadd (%p588_p1), %s466_s16, 4294967264  ;;  %p10_p2 = scmp.ge.s32.totalorder %s751_s18, 4   ;;  %s917_s12 = smov %s690_s13 }
 0x1c4   : > { %s918_s13 = smov %s694_s14  ;;  %s919_s14 = smov %s762_s23 }
 0x1c5   : > { %s920_s15 = smov %s751_s18  ;;  %12 = sbr.rel (!%p10_p2) target bundleno = 3 (0x3), region = 213 }
 0x1ca   :  { %478 = vsyncpa [#allocation6], 1 }
 0x1cb   :  { %480 = vsyncpa [#allocation6 + $0x1], 1 }

// kernel: custom-call.12
= control target key start
LH: loop header
LB: loop body
LE: loop exit
PB: predicated region body
PF: predicated region fallthrough
CT: control target
= control target key end

     0   :  { %s349_s6 = smov 0   ;;  %s351_s7 = smov 0   ;;  %s396_s0 = inlined_call_operand.vmem [shape: f32[2,1,3,3], index: 0, kind: input, shape index: {}]   ;;  %s397_s1 = inlined_call_operand.vmem [shape: f32[2,1,3,3], index: 1, kind: output, shape index: {}]  }
   0x1   :  { %s353_s8 = smov 0  }
   0x2 LB: > { %s275_s9 = sadd.s32 4294967295, %s336_s8   ;;  %s33_s10 = sadd.s32 1, %s332_s7  ;;  %s336_s8 = sphi %s353_s8, %s7_s8   ;;  %s332_s7 = sphi %s351_s7, %s399_s7   ;;  %s328_s6 = sphi %s349_s6, %s398_s6  }
   0x3   : > { %p35_p0 = scmp.ge.s32.totalorder %s33_s10, 2  ;;  %p277_p1 = scmp.ge.s32.totalorder %s336_s8, 2 }
   0x4   : > { %s49_s11 = sand.u32 (!%p277_p1), 1, %s336_s8   ;;  %s279_s12 = sshll.u32 (!%p277_p1), %s332_s7, 2 }
   0x5   : > { %s401_s10 = smov (%p35_p0, %s33_s10), 0  ;;  %47 = sbr.rel (%p277_p1) target bundleno = 12 (0xc), region = 16 }
   0x6   : > { %s278_s13 = sshll.u32 (!%p277_p1), %s49_s11, 2  ;;  %s56_s16 = scalar_lea.vmem (!%p277_p1), %s396_s0, %s279_s12 }
   0x7   : > { %s51_s17 = scalar_lea.vmem (!%p277_p1), [#allocation1], %s278_s13 }
   0xa   : > { %v73_v0 = vld [vmem:[%s56_s16] sm:$0xf] }
   0xb   : > { %74 = vst [vmem:[%s51_s17] sm:$0xf] %v73_v0 }
   0xc PF: > { %p280_p2 = scmp.ge.s32.totalorder %s336_s8, 1  ;;  %p91_p3 = scmp.lt.s32.totalorder %s336_s8, 3 }
   0xe   : > { %p92_p4 = pnand %p280_p2, %p91_p3 }
  0x10   : > { %95 = sbr.rel (%p92_p4) target bundleno = 500 (0x1f4), region = 50 }
  0x15   : > { %s376_s18 = sand.u32 1, %s275_s9   ;;  %v114_v1 = vlaneseq  ;;  %v338_v11 = vmov -1.0   ;;  %s284_s22 = sshll.u32 %s328_s6, 2 }
  0x16   : > { %s281_s19 = sshll.u32 %s376_s18, 2  ;;  %s182_s25 = scalar_lea.vmem %s397_s1, %s284_s22 }
  0x17   : > { %s104_s20 = scalar_lea.vmem [#allocation1], %s281_s19  ;;  %v115_v3 = vand.u32 127, %v114_v1  ;;  %v118_v4 = vshrl.u32 %v114_v1, 7  ;;  %s108_s21 = scalar_lea.vmem [#allocation3], %s281_s19 }
  0x18   : > { %v112_v2 = vld [vmem:[%s104_s20] sm:$0xf] }
  0x19   : > { %113 = vst [vmem:[#allocation0] sm:$0xf] %v112_v2  ;;  %vm116_vm0 = vcmp.lt.s32.totalorder %v115_v3, 3  ;;  %vm125_vm1 = vcmp.le.s32.totalorder %v118_v4, %v115_v3  ;;  %vm120_vm2 = vcmp.eq.s32.totalorder %v118_v4, %v115_v3  ;;  %vm139_vm4 = vcmp.eq.s32.totalorder %v115_v3, 2 }
  0x1a   : > { %vm126_vm3 = vmand %vm125_vm1, %vm116_vm0  ;;  %vm136_vm5 = vcmp.eq.s32.totalorder %v115_v3, %v118_v4  ;;  %v140_v12 = vsel %vm139_vm4, 1.0, %v338_v11  ;;  %vm147_vm6 = vcmp.eq.s32.totalorder %v115_v3, 1  ;;  %vm156_vm7 = vcmp.eq.s32.totalorder %v115_v3, 0 }
  0x1b   : > { %v141_v13 = vsel %vm136_vm5, %v140_v12, 0.0 }
  0x20   : > { %v121_v5 = vld [vmem:[#allocation0] sm:$0xff] }
  0x21   : > { %v122_v6 = vsel %vm120_vm2, %v121_v5, 0.0  ;;  %v127_v7 = vsel %vm126_vm3, %v121_v5, 0.0 }
  0x22   : > { %123 = vadd.xlane.f32.xlu0 %v122_v6 }
  0xab   : > { %v124_v8 = vpop.xlane.xlu0 %123 }
  0xac   : > { %312 = vrcp.f32 %v124_v8  ;;  %vm163_vm8 = vweird.f32 %v124_v8 }
  0xb9   : > { %v313_v9 = vpop.eup %312 }
  0xba   : > { %v129_v10 = vmul.f32 %v313_v9, %v127_v7 }
  0xbc   : > { %130 = vst [vmem:[#allocation4] sm:$0xff] %v129_v10 }
  0xc3   : > { %v143_v14 = vld [vmem:[#allocation4 + $0x1] ss:$0 sm:$0xff]  ;;  %v152_v17 = vld [vmem:[#allocation4] ss:$0 sm:$0xff] }
  0xc4   : > { %v144_v15 = vxor.u32 2147483648, %v143_v14  ;;  %v153_v19 = vxor.u32 2147483648, %v152_v17 }
  0xc6   : > { %v148_v16 = vmul.f32 %v144_v15, %v141_v13 }
  0xc8   : > { %149 = vadd.xlane.f32.xlu0 %v148_v16 }
 0x151   : > { %v150_v18 = vpop.xlane.xlu0 %149 }
 0x152   : > { %v151_v20 = vsel %vm147_vm6, %v150_v18, %v141_v13 }
 0x153   : > { %v157_v21 = vmul.f32 %v153_v19, %v151_v20 }
 0x155   : > { %158 = vadd.xlane.f32.xlu1 %v157_v21 }
 0x1de   : > { %v159_v22 = vpop.xlane.xlu1 %158 }
 0x1df   : > { %v160_v23 = vsel %vm156_vm7, %v159_v22, %v151_v20 }
 0x1e0   : > { %v162_v24 = vmul.f32 %v313_v9, %v160_v23 }
 0x1e2   : > { %v164_v25 = vsel %vm163_vm8, %v160_v23, %v162_v24 }
 0x1e3   : > { %165 = vst [vmem:[#allocation2] sm:$0xff] %v164_v25 }
 0x1ea   : > { %v170_v26 = vld [vmem:[#allocation2] sm:$0xf] }
 0x1eb   : > { %173 = vst [vmem:[%s108_s21] sm:$0xf] %v170_v26 }
 0x1f2   : > { %v199_v27 = vld [vmem:[%s108_s21] sm:$0xf] }
 0x1f3   : > { %200 = vst [vmem:[%s182_s25] sm:$0xf] %v199_v27 }
 0x1f4 PF: > { %s7_s8 = sadd.s32 1, %s336_s8   ;;  %s398_s6 = smov %s332_s7 }
 0x1f5   : > { %p4_p5 = scmp.ge.s32.totalorder %s7_s8, 4   ;;  %s399_s7 = smov %s401_s10 }
 0x1f7   :  { %6 = sbr.rel (!%p4_p5) target bundleno = 2 (0x2), region = 111 }

// kernel: custom-call.13
= control target key start
LH: loop header
LB: loop body
LE: loop exit
PB: predicated region body
PF: predicated region fallthrough
CT: control target
= control target key end

     0   :  { %s350_s6 = smov 0   ;;  %s352_s7 = smov 0   ;;  %s397_s0 = inlined_call_operand.vmem [shape: f32[2,1,3,3], index: 0, kind: input, shape index: {}]   ;;  %s398_s1 = inlined_call_operand.vmem [shape: f32[2,1,3,3], index: 1, kind: output, shape index: {}]  }
   0x1   :  { %s354_s8 = smov 0  }
   0x2 LB: > { %s276_s9 = sadd.s32 4294967295, %s337_s8   ;;  %s33_s10 = sadd.s32 1, %s333_s7  ;;  %s337_s8 = sphi %s354_s8, %s7_s8   ;;  %s333_s7 = sphi %s352_s7, %s400_s7   ;;  %s329_s6 = sphi %s350_s6, %s399_s6  }
   0x3   : > { %p35_p0 = scmp.ge.s32.totalorder %s33_s10, 2  ;;  %p278_p1 = scmp.ge.s32.totalorder %s337_s8, 2 }
   0x4   : > { %s49_s11 = sand.u32 (!%p278_p1), 1, %s337_s8   ;;  %s280_s12 = sshll.u32 (!%p278_p1), %s333_s7, 2 }
   0x5   : > { %s402_s10 = smov (%p35_p0, %s33_s10), 0  ;;  %47 = sbr.rel (%p278_p1) target bundleno = 12 (0xc), region = 16 }
   0x6   : > { %s279_s13 = sshll.u32 (!%p278_p1), %s49_s11, 2  ;;  %s56_s16 = scalar_lea.vmem (!%p278_p1), %s397_s0, %s280_s12 }
   0x7   : > { %s51_s17 = scalar_lea.vmem (!%p278_p1), [#allocation1], %s279_s13 }
   0xa   : > { %v73_v0 = vld [vmem:[%s56_s16] sm:$0xf] }
   0xb   : > { %74 = vst [vmem:[%s51_s17] sm:$0xf] %v73_v0 }
   0xc PF: > { %p281_p2 = scmp.ge.s32.totalorder %s337_s8, 1  ;;  %p91_p3 = scmp.lt.s32.totalorder %s337_s8, 3 }
   0xe   : > { %p92_p4 = pnand %p281_p2, %p91_p3 }
  0x10   : > { %95 = sbr.rel (%p92_p4) target bundleno = 500 (0x1f4), region = 50 }
  0x15   : > { %s377_s18 = sand.u32 1, %s276_s9   ;;  %v114_v1 = vlaneseq  ;;  %v339_v11 = vmov -1.0   ;;  %s285_s22 = sshll.u32 %s329_s6, 2 }
  0x16   : > { %s282_s19 = sshll.u32 %s377_s18, 2  ;;  %s183_s25 = scalar_lea.vmem %s398_s1, %s285_s22 }
  0x17   : > { %s104_s20 = scalar_lea.vmem [#allocation1], %s282_s19  ;;  %v115_v3 = vand.u32 127, %v114_v1  ;;  %v118_v4 = vshrl.u32 %v114_v1, 7  ;;  %s108_s21 = scalar_lea.vmem [#allocation3], %s282_s19 }
  0x18   : > { %v112_v2 = vld [vmem:[%s104_s20] sm:$0xf] }
  0x19   : > { %113 = vst [vmem:[#allocation0] sm:$0xf] %v112_v2  ;;  %vm116_vm0 = vcmp.lt.s32.totalorder %v115_v3, 3  ;;  %vm125_vm1 = vcmp.ge.s32.totalorder %v118_v4, %v115_v3  ;;  %vm120_vm2 = vcmp.eq.s32.totalorder %v118_v4, %v115_v3  ;;  %vm139_vm4 = vcmp.eq.s32.totalorder %v115_v3, 0 }
  0x1a   : > { %vm126_vm3 = vmand %vm125_vm1, %vm116_vm0  ;;  %vm136_vm5 = vcmp.eq.s32.totalorder %v115_v3, %v118_v4  ;;  %v140_v12 = vsel %vm139_vm4, 1.0, %v339_v11  ;;  %vm147_vm6 = vcmp.eq.s32.totalorder %v115_v3, 1  ;;  %vm157_vm7 = vcmp.eq.s32.totalorder %v115_v3, 2 }
  0x1b   : > { %v141_v13 = vsel %vm136_vm5, %v140_v12, 0.0 }
  0x20   : > { %v121_v5 = vld [vmem:[#allocation0] sm:$0xff] }
  0x21   : > { %v122_v6 = vsel %vm120_vm2, %v121_v5, 0.0  ;;  %v127_v7 = vsel %vm126_vm3, %v121_v5, 0.0 }
  0x22   : > { %123 = vadd.xlane.f32.xlu0 %v122_v6 }
  0xab   : > { %v124_v8 = vpop.xlane.xlu0 %123 }
  0xac   : > { %313 = vrcp.f32 %v124_v8  ;;  %vm164_vm8 = vweird.f32 %v124_v8 }
  0xb9   : > { %v314_v9 = vpop.eup %313 }
  0xba   : > { %v129_v10 = vmul.f32 %v314_v9, %v127_v7 }
  0xbc   : > { %130 = vst [vmem:[#allocation4] sm:$0xff] %v129_v10 }
  0xc3   : > { %v143_v14 = vld [vmem:[#allocation4 + $0x1] ss:$0 sm:$0xff]  ;;  %v153_v17 = vld [vmem:[#allocation4 + $0x2] ss:$0 sm:$0xff] }
  0xc4   : > { %v144_v15 = vxor.u32 2147483648, %v143_v14  ;;  %v154_v19 = vxor.u32 2147483648, %v153_v17 }
  0xc6   : > { %v148_v16 = vmul.f32 %v144_v15, %v141_v13 }
  0xc8   : > { %149 = vadd.xlane.f32.xlu0 %v148_v16 }
 0x151   : > { %v150_v18 = vpop.xlane.xlu0 %149 }
 0x152   : > { %v151_v20 = vsel %vm147_vm6, %v150_v18, %v141_v13 }
 0x153   : > { %v158_v21 = vmul.f32 %v154_v19, %v151_v20 }
 0x155   : > { %159 = vadd.xlane.f32.xlu1 %v158_v21 }
 0x1de   : > { %v160_v22 = vpop.xlane.xlu1 %159 }
 0x1df   : > { %v161_v23 = vsel %vm157_vm7, %v160_v22, %v151_v20 }
 0x1e0   : > { %v163_v24 = vmul.f32 %v314_v9, %v161_v23 }
 0x1e2   : > { %v165_v25 = vsel %vm164_vm8, %v161_v23, %v163_v24 }
 0x1e3   : > { %166 = vst [vmem:[#allocation2] sm:$0xff] %v165_v25 }
 0x1ea   : > { %v171_v26 = vld [vmem:[#allocation2] sm:$0xf] }
 0x1eb   : > { %174 = vst [vmem:[%s108_s21] sm:$0xf] %v171_v26 }
 0x1f2   : > { %v200_v27 = vld [vmem:[%s108_s21] sm:$0xf] }
 0x1f3   : > { %201 = vst [vmem:[%s183_s25] sm:$0xf] %v200_v27 }
 0x1f4 PF: > { %s7_s8 = sadd.s32 1, %s337_s8   ;;  %s399_s6 = smov %s333_s7 }
 0x1f5   : > { %p4_p5 = scmp.ge.s32.totalorder %s7_s8, 4   ;;  %s400_s7 = smov %s402_s10 }
 0x1f7   :  { %6 = sbr.rel (!%p4_p5) target bundleno = 2 (0x2), region = 112 }

// kernel: qtor_forward.1
= control target key start
LH: loop header
LB: loop body
LE: loop exit
PB: predicated region body
PF: predicated region fallthrough
CT: control target
= control target key end

     0   :  { %s1776_s21 = smov 0   ;;  %s2033_s0 = inlined_call_operand.vmem [shape: f32[2,8,3], index: 0, kind: input, shape index: {}]   ;;  %s2034_s1 = inlined_call_operand.vmem [shape: f32[2,8,1], index: 1, kind: input, shape index: {}]   ;;  %s2035_s2 = inlined_call_operand.vmem [shape: f32[2,128], index: 2, kind: input, shape index: {}]   ;;  %s2036_s3 = inlined_call_operand.vmem [shape: f32[3,128], index: 3, kind: input, shape index: {}]   ;;  %s2037_s4 = inlined_call_operand.vmem [shape: f32[1,128], index: 4, kind: input, shape index: {}]   ;;  %s2038_s5 = inlined_call_operand.vmem [shape: bf16[128,128], index: 5, kind: input, shape index: {}]   ;;  %s2039_s6 = inlined_call_operand.vmem [shape: f32[1,128], index: 6, kind: input, shape index: {}]   ;;  %s2040_s7 = inlined_call_operand.vmem [shape: bf16[128,128], index: 7, kind: input, shape index: {}]   ;;  %s2041_s8 = inlined_call_operand.vmem [shape: f32[1,128], index: 8, kind: input, shape index: {}]   ;;  %s2042_s9 = inlined_call_operand.vmem [shape: bf16[128,64], index: 9, kind: input, shape index: {}]   ;;  %s2043_s10 = inlined_call_operand.vmem [shape: f32[1,64], index: 10, kind: input, shape index: {}]   ;;  %s2044_s11 = inlined_call_operand.vmem [shape: bf16[64,128], index: 11, kind: input, shape index: {}]   ;;  %s2045_s12 = inlined_call_operand.vmem [shape: bf16[128,128], index: 12, kind: input, shape index: {}]   ;;  %s2046_s13 = inlined_call_operand.vmem [shape: f32[1,128], index: 13, kind: input, shape index: {}]   ;;  %s2047_s14 = inlined_call_operand.vmem [shape: bf16[128,6], index: 14, kind: input, shape index: {}]   ;;  %s2048_s15 = inlined_call_operand.vmem [shape: f32[1,6], index: 15, kind: input, shape index: {}]   ;;  %s2049_s16 = inlined_call_operand.vmem [shape: f32[2,2,128], index: 16, kind: output, shape index: {}]  }
   0x1   :  { %2050 = sst [smem:[#allocation2_spill]] %s2033_s0 }
   0x2 LB: > { %s1375_s22 = sadd.s32 4294967295, %s1676_s21   ;;  %p1379_p0 = scmp.ge.s32.totalorder %s1676_s21, 1  ;;  %s1676_s21 = sphi %s1776_s21, %s26_s21  }
   0x3   : > { %p470_p1 = scmp.lt.s32.totalorder %s1676_s21, 3 }
   0x5   : > { %p471_p2 = pnand %p1379_p0, %p470_p1 }
   0x6   : > { %p522_p3 = scmp.lt.s32.totalorder (!%p471_p2), %s1375_s22, 1  ;;  %s2051_s30 = sld [smem:[#allocation2_spill]] (!%p471_p2) }
   0x7   : > { %474 = sbr.rel (%p471_p2) target bundleno = 2527 (0x9df), region = 84  ;;  %s1683_s17 = smov (!%p471_p2), 125  }
   0x8   : > { %s1684_s18 = smov (!%p471_p2), 3   ;;  %s1685_s19 = smov (!%p471_p2), 126  }
   0x9   : > { %s1686_s20 = smov (!%p471_p2), 123   ;;  %s1687_s23 = smov (!%p471_p2), 124  }
   0xa   : > { %s1689_s24 = smov (!%p471_p2), 2   ;;  %s1690_s26 = smov (!%p471_p2), 6  }
   0xc   : > { %v1622_v0 = vld [vmem:[%s2038_s5 + $0x38] sm:$0xff]   ;;  %v1678_v1 = vmov 0   ;;  %v1679_v2 = vmov 2   ;;  %s2053_s22 = smov (!%p522_p3, %s1375_s22), 1  ;;  %v1680_v3 = vmov 0.0   ;;  %v1623_v4 = vld [vmem:[%s2038_s5 + $0x30] sm:$0xff]   ;;  %v542_v17 = vlaneseq }
   0xd   : > { %1617 = vset.pattern.permute.xlu0 %v1678_v1  ;;  %1619 = vset.pattern.permute.xlu1 %v1679_v2  ;;  %s1380_s25 = sshll.u32 %s2053_s22, 3  ;;  %v1624_v6 = vld [vmem:[%s2038_s5 + $0x28] sm:$0xff]   ;;  %v1681_v7 = vmov 1   ;;  %v1625_v8 = vld [vmem:[%s2038_s5 + $0x20] sm:$0xff]   ;;  %v1626_v9 = vld [vmem:[%s2038_s5 + $0x18] sm:$0xff]   ;;  %vm1682_vm0 = vmmov 0  }
   0xe   : > { %1484 = vmatprep.subr.bf16.mxu0 %v1680_v3  ;;  %1504 = vmatprep.subr.bf16.mxu1 %v1680_v3  ;;  %s525_s0 = scalar_lea.vmem %s2051_s30, %s1380_s25  ;;  %v1627_v10 = vld [vmem:[%s2038_s5 + $0x10] sm:$0xff]   ;;  %s529_s30 = scalar_lea.vmem %s2034_s1, %s1380_s25  ;;  %v1630_v11 = vld [vmem:[%s2040_s7 + $0x38] sm:$0xff]   ;;  %v1628_v14 = vld [vmem:[%s2038_s5 + $0x8] sm:$0xff]   ;;  %v1843_v18 = vshrl.u32 %v542_v17, 7  ;;  %vm948_vm1 = vcmask 523264   ;;  %vm1225_vm2 = vcmask 17408  }
   0xf   : > { %1485 = vmatpush3.bf16.msra.mxu0 %v1622_v0  ;;  %v535_v5 = vld [vmem:[%s525_s0] sm:$0xff]  ;;  %1500 = vmatprep.mubr.msk.bf16.mxu0 %vm1682_vm0, %v1680_v3  ;;  %v1631_v13 = vld [vmem:[%s2040_s7 + $0x30] sm:$0xff]   ;;  %v1632_v15 = vld [vmem:[%s2040_s7 + $0x28] sm:$0xff]   ;;  %s1688_s25 = smov 127   ;;  %vm1295_vm3 = vcmask 7168   ;;  %vm1297_vm4 = vcmask 15360  }
  0x10   : > { %1486 = vmatprep.subr.bf16.mxu0 %v1680_v3  ;;  %539 = vperm.xlu0 %1617, %v535_v5   ;;  %v689_v12 = vld [vmem:[%s529_s30] sm:$0xff]  ;;  %v544_v19 = vsub.s32 0, %v1843_v18  ;;  %v553_v20 = vsub.s32 1, %v1843_v18  ;;  %v563_v21 = vsub.s32 2, %v1843_v18  ;;  %v1634_v39 = vld [vmem:[%s2040_s7 + $0x18] sm:$0xff]   ;;  %v1635_v40 = vld [vmem:[%s2040_s7 + $0x10] sm:$0xff]  }
  0x11   : > { %558 = vperm.xlu1 %1619, %v535_v5   ;;  %1520 = vmatprep.mubr.msk.bf16.mxu1 %vm1682_vm0, %v1680_v3  ;;  %v1629_v16 = vld [vmem:[%s2038_s5] sm:$0xff]   ;;  %v1636_v41 = vld [vmem:[%s2040_s7 + $0x8] sm:$0xff]   ;;  %v1638_v43 = vld [vmem:[%s2042_s9 + $0x38] sm:$0xff]   ;;  %s1382_s27 = sshll.u32 %s2053_s22, 1  ;;  %vm1303_vm5 = vcmask 23552   ;;  %vm1305_vm6 = vcmask 48128  }
  0x12   : > { %1505 = vmatpush3.bf16.msra.mxu1 %v1630_v11  ;;  %v536_v22 = vld [vmem:[%s2036_s3] sm:$0x7]  ;;  %v1639_v44 = vld [vmem:[%s2042_s9 + $0x30] sm:$0xff]   ;;  %v1640_v45 = vld [vmem:[%s2042_s9 + $0x28] sm:$0xff]   ;;  %vm1307_vm7 = vcmask 72704   ;;  %s533_s30 = scalar_lea.vmem %s2049_s16, %s1382_s27 }
  0x13   : > { %1487 = vmatpush3.bf16.msra.mxu0 %v1623_v4  ;;  %1506 = vmatprep.subr.bf16.mxu1 %v1680_v3  ;;  %v545_v24 = vrot.slane %v536_v22, %v544_v19  ;;  %v554_v25 = vrot.slane %v536_v22, %v553_v20  ;;  %v564_v26 = vrot.slane %v536_v22, %v563_v21  ;;  %v1383_v33 = vld [vmem:[%s2037_s4] ss:$0 sm:$0xff]  ;;  %v1642_v47 = vld [vmem:[%s2042_s9 + $0x18] sm:$0xff]   ;;  %v1643_v48 = vld [vmem:[%s2042_s9 + $0x10] sm:$0xff]  }
  0x14   : > { %1488 = vmatprep.subr.bf16.mxu0 %v1680_v3  ;;  %1618 = vset.pattern.permute.xlu0 %v1681_v7  ;;  %v1633_v38 = vld [vmem:[%s2040_s7 + $0x20] sm:$0xff]   ;;  %v1646_v4 = vld [vmem:[%s2044_s11 + $0x18] sm:$0xff]  }
  0x15   : > { %1620 = vset.pattern.permute.xlu1 %v1678_v1  ;;  %548 = vperm.xlu0 %1618, %v535_v5   ;;  %v1637_v42 = vld [vmem:[%s2040_s7] sm:$0xff]   ;;  %v1647_v5 = vld [vmem:[%s2044_s11 + $0x10] sm:$0xff]   ;;  %v1650_v22 = vld [vmem:[%s2045_s12 + $0x38] sm:$0xff]  }
  0x16   : > { %692 = vperm.xlu1 %1620, %v689_v12   ;;  %1507 = vmatpush3.bf16.msra.mxu1 %v1631_v13  ;;  %v1641_v46 = vld [vmem:[%s2042_s9 + $0x20] sm:$0xff]  }
  0x17   : > { %1489 = vmatpush3.bf16.msra.mxu0 %v1624_v6  ;;  %1508 = vmatprep.subr.bf16.mxu1 %v1680_v3  ;;  %v1384_v49 = vld [vmem:[%s2039_s6] ss:$0 sm:$0xff]  ;;  %v1648_v6 = vld [vmem:[%s2044_s11 + $0x8] sm:$0xff]  }
  0x18   : > { %1490 = vmatprep.subr.bf16.mxu0 %v1680_v3  ;;  %v1645_v2 = vld [vmem:[%s2042_s9] sm:$0xff]  }
  0x19   : > { %1621 = vset.pattern.permute.xlu0 %v1678_v1  ;;  %v1644_v1 = vld [vmem:[%s2042_s9 + $0x8] sm:$0xff]   ;;  %v719_v7 = vld [vmem:[%s2041_s8] sm:$0x1] }
  0x1a   : > { %1509 = vmatpush3.bf16.msra.mxu1 %v1632_v15  ;;  %v1649_v15 = vld [vmem:[%s2044_s11] sm:$0xff]  }
  0x1b   : > { %1491 = vmatpush3.bf16.msra.mxu0 %v1625_v8  ;;  %1510 = vmatprep.subr.bf16.mxu1 %v1680_v3  ;;  %v1414_v18 = vld [vmem:[%s2046_s13] ss:$0 sm:$0xff] }
  0x1c   : > { %1492 = vmatprep.subr.bf16.mxu0 %v1680_v3 }
  0x1e   : > { %1511 = vmatpush3.bf16.msra.mxu1 %v1633_v38  ;;  %v1663_v38 = vld [vmem:[%s2047_s14 + $0x10] sm:$0xff]  }
  0x1f   : > { %1493 = vmatpush3.bf16.msra.mxu0 %v1626_v9  ;;  %1512 = vmatprep.subr.bf16.mxu1 %v1680_v3 }
  0x20   : > { %1494 = vmatprep.subr.bf16.mxu0 %v1680_v3 }
  0x22   : > { %1513 = vmatpush3.bf16.msra.mxu1 %v1634_v39 }
  0x23   : > { %1495 = vmatpush3.bf16.msra.mxu0 %v1627_v10  ;;  %1514 = vmatprep.subr.bf16.mxu1 %v1680_v3 }
  0x24   : > { %1496 = vmatprep.subr.bf16.mxu0 %v1680_v3 }
  0x26   : > { %1515 = vmatpush3.bf16.msra.mxu1 %v1635_v40  ;;  %v992_v40 = vld [vmem:[%s2035_s2] sm:$0x3] }
  0x27   : > { %1497 = vmatpush3.bf16.msra.mxu0 %v1628_v14  ;;  %1516 = vmatprep.subr.bf16.mxu1 %v1680_v3 }
  0x28   : > { %1498 = vmatprep.subr.bf16.mxu0 %v1680_v3 }
  0x2a   : > { %1517 = vmatpush3.bf16.msra.mxu1 %v1636_v41 }
  0x2b   : > { %1499 = vmatpush3.bf16.msra.mxu0 %v1629_v16  ;;  %1518 = vmatprep.subr.bf16.mxu1 %v1680_v3  ;;  %v826_v16 = vld [vmem:[%s2043_s10] sm:$0x1] }
  0x2c   : > { %1524 = vmatprep.subr.bf16.mxu0 %v1680_v3 }
  0x2e   : > { %1519 = vmatpush3.bf16.msra.mxu1 %v1637_v42 }
  0x2f   : > { %1544 = vmatprep.subr.bf16.mxu1 %v1680_v3 }
  0x8b   : > { %v540_v23 = vpop.permute.xlu0 %539 }
  0x8c   : > { %v559_v27 = vpop.permute.xlu1 %558  ;;  %v546_v29 = vmul.f32 %v545_v24, %v540_v23 }
  0x8d   : > { %v565_v31 = vmul.f32 %v564_v26, %v559_v27  ;;  %v1651_v26 = vld [vmem:[%s2045_s12 + $0x30] sm:$0xff]   ;;  %v1652_v27 = vld [vmem:[%s2045_s12 + $0x28] sm:$0xff]  }
  0x90   : > { %v549_v28 = vpop.permute.xlu0 %548 }
  0x91   : > { %v555_v30 = vmul.f32 %v554_v25, %v549_v28  ;;  %v693_v53 = vpop.permute.xlu1 %692  ;;  %v1653_v28 = vld [vmem:[%s2045_s12 + $0x20] sm:$0xff]  }
  0x93   : > { %v556_v32 = vadd.f32 %v555_v30, %v546_v29  ;;  %v1654_v29 = vld [vmem:[%s2045_s12 + $0x18] sm:$0xff]   ;;  %v1655_v30 = vld [vmem:[%s2045_s12 + $0x10] sm:$0xff]  }
  0x95   : > { %v566_v34 = vadd.f32 %v565_v31, %v556_v32  ;;  %v1656_v31 = vld [vmem:[%s2045_s12 + $0x8] sm:$0xff]   ;;  %v1657_v32 = vld [vmem:[%s2045_s12] sm:$0xff]  }
  0x97   : > { %v574_v35 = vadd.f32 %v1383_v33, %v566_v34  ;;  %v1658_v33 = vld [vmem:[%s2047_s14 + $0x38] sm:$0xff]   ;;  %v1659_v34 = vld [vmem:[%s2047_s14 + $0x30] sm:$0xff]  }
  0x99   : > { %v575_v36 = vmax.f32 %v574_v35, 0.0  ;;  %v1660_v35 = vld [vmem:[%s2047_s14 + $0x28] sm:$0xff]  }
  0x9b   : > { %v576_v37 = vpack.c.bf16 %v575_v36, %v575_v36  ;;  %v1661_v36 = vld [vmem:[%s2047_s14 + $0x20] sm:$0xff]  }
  0x9d   : > { %1501 = vmatmul.mubr.bf16.vlgmr.msra.gmra.mxu0 %v576_v37  ;;  %v1662_v37 = vld [vmem:[%s2047_s14 + $0x18] sm:$0xff]  }
  0x9e   : > { %1540 = vmatprep.mubr.msk.bf16.mxu0 %vm1682_vm0, %v1680_v3  ;;  %1525 = vmatpush3.bf16.msra.mxu0 %v1638_v43 }
  0x9f   : > { %1526 = vmatprep.subr.bf16.mxu0 %v1680_v3 }
  0xa2   : > { %1527 = vmatpush3.bf16.msra.mxu0 %v1639_v44 }
  0xa3   : > { %1528 = vmatprep.subr.bf16.mxu0 %v1680_v3 }
  0xa6   : > { %1529 = vmatpush3.bf16.msra.mxu0 %v1640_v45 }
  0xa7   : > { %1530 = vmatprep.subr.bf16.mxu0 %v1680_v3 }
  0xaa   : > { %1531 = vmatpush3.bf16.msra.mxu0 %v1641_v46 }
  0xab   : > { %1532 = vmatprep.subr.bf16.mxu0 %v1680_v3 }
  0xae   : > { %1533 = vmatpush3.bf16.msra.mxu0 %v1642_v47 }
  0xaf   : > { %1534 = vmatprep.subr.bf16.mxu0 %v1680_v3 }
  0xb2   : > { %1535 = vmatpush3.bf16.msra.mxu0 %v1643_v48  ;;  %v1664_v48 = vld [vmem:[%s2047_s14 + $0x8] sm:$0xff]  }
  0xb3   : > { %1536 = vmatprep.subr.bf16.mxu0 %v1680_v3 }
  0xb6   : > { %1537 = vmatpush3.bf16.msra.mxu0 %v1644_v1 }
  0xb7   : > { %1538 = vmatprep.subr.bf16.mxu0 %v1680_v3 }
  0xba   : > { %1539 = vmatpush3.bf16.msra.mxu0 %v1645_v2 }
  0xbb   : > { %1576 = vmatprep.subr.bf16.mxu0 %v1680_v3 }
 0x15d   : > { %v682_v50 = vpop.f32.mrf.mxu0 }
 0x15e   : > { %v683_v51 = vadd.f32 %v1384_v49, %v682_v50  ;;  %v1665_v49 = vld [vmem:[%s2047_s14] sm:$0xff]  }
 0x15f   : > { %v1502_v52 = vpop.f32.mrf.mxu0 }
 0x160   : > { %v688_v54 = vmax.f32 %v683_v51, 0.0 }
 0x161   : > { %v685_v55 = vpop.f32.mrf.mxu0 }
 0x162   : > { %v695_v56 = vmul.f32 %v693_v53, %v688_v54 }
 0x163   : > { %v1503_v57 = vpop.f32.mrf.mxu0 }
 0x164   : > { %v696_v58 = vrot.slane %v695_v56, 4 }
 0x166   : > { %v697_v59 = vadd.f32 %v696_v58, %v695_v56 }
 0x168   : > { %v698_v60 = vrot.slane %v697_v59, 2 }
 0x16a   : > { %v699_v61 = vadd.f32 %v698_v60, %v697_v59 }
 0x16c   : > { %v700_v62 = vrot.slane %v699_v61, 1 }
 0x16e   : > { %v701_v63 = vadd.f32 %v700_v62, %v699_v61 }
 0x170   : > { %v702_v0 = vpack.c.bf16 %v701_v63, %v701_v63 }
 0x172   : > { %1521 = vmatmul.mubr.bf16.vlgmr.msra.gmra.mxu1 %v702_v0 }
 0x173   : > { %1552 = vmatprep.mubr.msk.bf16.mxu1 %vm1682_vm0, %v1680_v3  ;;  %1545 = vmatpush3.bf16.msra.mxu1 %v1646_v4 }
 0x174   : > { %1546 = vmatprep.subr.bf16.mxu1 %v1680_v3 }
 0x177   : > { %1547 = vmatpush3.bf16.msra.mxu1 %v1647_v5 }
 0x178   : > { %1548 = vmatprep.subr.bf16.mxu1 %v1680_v3 }
 0x17b   : > { %1549 = vmatpush3.bf16.msra.mxu1 %v1648_v6 }
 0x17c   : > { %1550 = vmatprep.subr.bf16.mxu1 %v1680_v3 }
 0x17f   : > { %1551 = vmatpush3.bf16.msra.mxu1 %v1649_v15 }
 0x180   : > { %1556 = vmatprep.subr.bf16.mxu1 %v1680_v3 }
 0x232   : > { %v802_v8 = vpop.f32.mrf.mxu1 }
 0x233   : > { %v803_v9 = vadd.f32 %v802_v8, %v719_v7 }
 0x234   : > { %v1522_v10 = vpop.f32.mrf.mxu1 }
 0x235   : > { %v808_v11 = vmax.f32 %v803_v9, 0.0 }
 0x236   : > { %v805_v12 = vpop.f32.mrf.mxu1 }
 0x237   : > { %v809_v13 = vpack.c.bf16 %v808_v11, %v808_v11 }
 0x238   : > { %v1523_v14 = vpop.f32.mrf.mxu1 }
 0x239   : > { %1541 = vmatmul.mubr.bf16.vlgmr.msra.gmra.mxu0 %v809_v13 }
 0x23a   : > { %1592 = vmatprep.mubr.msk.bf16.mxu0 %vm1682_vm0, %v1680_v3  ;;  %1577 = vmatpush3.bf16.msra.mxu0 %v1658_v33 }
 0x23b   : > { %1578 = vmatprep.subr.bf16.mxu0 %v1680_v3 }
 0x23e   : > { %1579 = vmatpush3.bf16.msra.mxu0 %v1659_v34 }
 0x23f   : > { %1580 = vmatprep.subr.bf16.mxu0 %v1680_v3 }
 0x242   : > { %1581 = vmatpush3.bf16.msra.mxu0 %v1660_v35 }
 0x243   : > { %1582 = vmatprep.subr.bf16.mxu0 %v1680_v3 }
 0x246   : > { %1583 = vmatpush3.bf16.msra.mxu0 %v1661_v36 }
 0x247   : > { %1584 = vmatprep.subr.bf16.mxu0 %v1680_v3 }
 0x24a   : > { %1585 = vmatpush3.bf16.msra.mxu0 %v1662_v37 }
 0x24b   : > { %1586 = vmatprep.subr.bf16.mxu0 %v1680_v3 }
 0x24e   : > { %1587 = vmatpush3.bf16.msra.mxu0 %v1663_v38 }
 0x24f   : > { %1588 = vmatprep.subr.bf16.mxu0 %v1680_v3 }
 0x252   : > { %1589 = vmatpush3.bf16.msra.mxu0 %v1664_v48 }
 0x253   : > { %1590 = vmatprep.subr.bf16.mxu0 %v1680_v3 }
 0x256   : > { %1591 = vmatpush3.bf16.msra.mxu0 %v1665_v49 }
 0x2f9   : > { %v909_v17 = vpop.f32.mrf.mxu0 }
 0x2fa   : > { %v910_v20 = vadd.f32 %v909_v17, %v826_v16 }
 0x2fb   : > { %v1542_v21 = vpop.f32.mrf.mxu0 }
 0x2fc   : > { %v915_v23 = vpack.c.bf16 %v910_v20, %v910_v20 }
 0x2fd   : > { %v912_v24 = vpop.f32.mrf.mxu0 }
 0x2fe   : > { %1553 = vmatmul.mubr.msk.bf16.vlgmr.msra.gmra.mxu1 %vm948_vm1, %v915_v23 }
 0x2ff   : > { %v1543_v25 = vpop.f32.mrf.mxu0  ;;  %1557 = vmatpush3.bf16.msra.mxu1 %v1650_v22  ;;  %1572 = vmatprep.mubr.msk.bf16.mxu1 %vm1682_vm0, %v1680_v3 }
 0x300   : > { %1558 = vmatprep.subr.bf16.mxu1 %v1680_v3 }
 0x303   : > { %1559 = vmatpush3.bf16.msra.mxu1 %v1651_v26 }
 0x304   : > { %1560 = vmatprep.subr.bf16.mxu1 %v1680_v3 }
 0x307   : > { %1561 = vmatpush3.bf16.msra.mxu1 %v1652_v27 }
 0x308   : > { %1562 = vmatprep.subr.bf16.mxu1 %v1680_v3 }
 0x30b   : > { %1563 = vmatpush3.bf16.msra.mxu1 %v1653_v28 }
 0x30c   : > { %1564 = vmatprep.subr.bf16.mxu1 %v1680_v3 }
 0x30f   : > { %1565 = vmatpush3.bf16.msra.mxu1 %v1654_v29 }
 0x310   : > { %1566 = vmatprep.subr.bf16.mxu1 %v1680_v3 }
 0x313   : > { %1567 = vmatpush3.bf16.msra.mxu1 %v1655_v30 }
 0x314   : > { %1568 = vmatprep.subr.bf16.mxu1 %v1680_v3 }
 0x317   : > { %1569 = vmatpush3.bf16.msra.mxu1 %v1656_v31 }
 0x318   : > { %1570 = vmatprep.subr.bf16.mxu1 %v1680_v3  ;;  %v1423_v3 = vld [vmem:[%s2048_s15] ss:$0 sm:$0xff] }
 0x31b   : > { %1571 = vmatpush3.bf16.msra.mxu1 %v1657_v32 }
 0x3be   : > { %v986_v39 = vpop.f32.mrf.mxu1 }
 0x3bf   : > { %v996_v41 = vrot.slane %v986_v39, %v544_v19 }
 0x3c0   : > { %v1554_v42 = vpop.f32.mrf.mxu1 }
 0x3c1   : > { %v997_v43 = vadd.f32 %v996_v41, %v992_v40 }
 0x3c2   : > { %v989_v44 = vpop.f32.mrf.mxu1 }
 0x3c3   : > { %v998_v45 = vmax.f32 %v997_v43, 0.0 }
 0x3c4   : > { %v1555_v46 = vpop.f32.mrf.mxu1 }
 0x3c5   : > { %v999_v47 = vpack.c.bf16 %v998_v45, %v998_v45 }
 0x3c7   : > { %1573 = vmatmul.mubr.bf16.vlgmr.msra.gmra.mxu1 %v999_v47 }
 0x487   : > { %v1105_v19 = vpop.f32.mrf.mxu1 }
 0x488   : > { %v1106_v50 = vadd.f32 %v1414_v18, %v1105_v19 }
 0x489   : > { %v1574_v51 = vpop.f32.mrf.mxu1 }
 0x48a   : > { %v1111_v52 = vmax.f32 %v1106_v50, 0.0 }
 0x48b   : > { %v1108_v53 = vpop.f32.mrf.mxu1 }
 0x48c   : > { %v1112_v54 = vpack.c.bf16 %v1111_v52, %v1111_v52 }
 0x48d   : > { %v1575_v55 = vpop.f32.mrf.mxu1 }
 0x48e   : > { %1593 = vmatmul.mubr.bf16.vlgmr.msra.gmra.mxu0 %v1112_v54 }
 0x54e   : > { %v1218_v56 = vpop.f32.mrf.mxu0 }
 0x54f   : > { %v1219_v57 = vadd.f32 %v1423_v3, %v1218_v56 }
 0x550   : > { %v1594_v58 = vpop.f32.mrf.mxu0 }
 0x551   : > { %1233 = vrot.lane.b32.xlu0 %v1219_v57, %s1683_s17  ;;  %v1224_v59 = vmul.f32 %v1219_v57, %v1219_v57 }
 0x552   : > { %v1221_v60 = vpop.f32.mrf.mxu0 }
 0x553   : > { %v1226_v61 = vsel %vm1225_vm2, %v1224_v59, 0.0 }
 0x554   : > { %1227 = vadd.xlane.f32.xlu1 %v1226_v61  ;;  %v1595_v62 = vpop.f32.mrf.mxu0 }
 0x5c3   : > { %v1234_v4 = vpop.permute.xlu0 %1233 }
 0x5dd   : > { %v1228_v63 = vpop.xlane.xlu1 %1227 }
 0x5de   : > { %v1229_v0 = vmax.f32 %v1228_v63, 1e-12 }
 0x5e0   : > { %1666 = vrsqrt.f32 %v1229_v0 }
 0x5ed   : > { %v1667_v1 = vpop.eup %1666 }
 0x5ee   : > { %v2015_v2 = vmul.f32 %v1667_v1, %v1219_v57 }
 0x5f0   : > { %v1236_v5 = vmul.f32 %v1234_v4, %v2015_v2 }
 0x5f2   : > { %v1237_v6 = vsel %vm1225_vm2, %v1236_v5, 0.0 }
 0x5f3   : > { %1238 = vadd.xlane.f32.xlu0 %v1237_v6 }
 0x67c   : > { %v1239_v7 = vpop.xlane.xlu0 %1238 }
 0x67d   : > { %v1240_v8 = vmul.f32 %v1239_v7, %v2015_v2 }
 0x67f   : > { %1242 = vrot.lane.b32.xlu1 %v1240_v8, %s1684_s18 }
 0x6f1   : > { %v1243_v9 = vpop.permute.xlu1 %1242 }
 0x6f2   : > { %v1245_v10 = vsub.f32 %v1219_v57, %v1243_v9 }
 0x6f4   : > { %v1246_v11 = vmul.f32 %v1245_v10, %v1245_v10 }
 0x6f6   : > { %1248 = vrot.lane.b32.xlu0 %v1246_v11, %s1683_s17 }
 0x768   : > { %v1249_v12 = vpop.permute.xlu0 %1248 }
 0x769   : > { %v1251_v13 = vsel %vm1225_vm2, %v1249_v12, 0.0 }
 0x76a   : > { %1252 = vadd.xlane.f32.xlu1 %v1251_v13 }
 0x7f3   : > { %v1253_v14 = vpop.xlane.xlu1 %1252 }
 0x7f4   : > { %v1254_v15 = vmax.f32 %v1253_v14, 1e-12 }
 0x7f6   : > { %1668 = vrsqrt.f32 %v1254_v15 }
 0x803   : > { %v1669_v16 = vpop.eup %1668 }
 0x804   : > { %v1256_v17 = vmul.f32 %v1669_v16, %v1245_v10 }
 0x806   : > { %1262 = vrot.lane.b32.xlu0 %v1256_v17, %s1685_s19  ;;  %v1304_v38 = vsel %vm1303_vm5, %v2015_v2, %v1256_v17 }
 0x80a   : > { %1275 = vrot.lane.b32.xlu0 %v1256_v17, %s1686_s20 }
 0x80e   : > { %1258 = vrot.lane.b32.xlu0 %v1256_v17, %s1687_s23 }
 0x812   : > { %1271 = vrot.lane.b32.xlu0 %v1256_v17, %s1688_s25 }
 0x878   : > { %v1263_v20 = vpop.permute.xlu0 %1262 }
 0x879   : > { %v1265_v21 = vmul.f32 %v1263_v20, %v2015_v2 }
 0x87b   : > { %1267 = vrot.lane.b32.xlu0 %v1265_v21, %s1688_s25 }
 0x87c   : > { %v1276_v22 = vpop.permute.xlu0 %1275 }
 0x87d   : > { %v1278_v23 = vmul.f32 %v1276_v22, %v2015_v2 }
 0x87f   : > { %1280 = vrot.lane.b32.xlu0 %v1278_v23, %s1689_s24 }
 0x880   : > { %v1259_v24 = vpop.permute.xlu0 %1258 }
 0x881   : > { %v1261_v26 = vmul.f32 %v1259_v24, %v2015_v2 }
 0x884   : > { %v1272_v25 = vpop.permute.xlu0 %1271 }
 0x885   : > { %v1274_v29 = vmul.f32 %v1272_v25, %v2015_v2 }
 0x8ed   : > { %v1268_v27 = vpop.permute.xlu0 %1267 }
 0x8ee   : > { %v1270_v28 = vsub.f32 %v1261_v26, %v1268_v27 }
 0x8f0   : > { %1292 = vrot.lane.b32.xlu1 %v1270_v28, %s1689_s24  ;;  %1285 = vrot.lane.b32.xlu0 %v1270_v28, %s1688_s25 }
 0x8f1   : > { %v1281_v30 = vpop.permute.xlu0 %1280 }
 0x8f2   : > { %v1283_v31 = vsub.f32 %v1274_v29, %v1281_v30 }
 0x8f4   : > { %1289 = vrot.lane.b32.xlu0 %v1283_v31, %s1688_s25 }
 0x962   : > { %v1286_v32 = vpop.permute.xlu0 %1285  ;;  %v1293_v34 = vpop.permute.xlu1 %1292 }
 0x966   : > { %v1290_v33 = vpop.permute.xlu0 %1289 }
 0x967   : > { %v1296_v35 = vsel %vm1295_vm3, %v1286_v32, %v1290_v33 }
 0x968   : > { %v1298_v36 = vsel %vm1297_vm4, %v1296_v35, %v1293_v34 }
 0x969   : > { %1300 = vrot.lane.b32.xlu0 %v1298_v36, %s1690_s26 }
 0x9db   : > { %v1301_v37 = vpop.permute.xlu0 %1300 }
 0x9dc   : > { %v1306_v39 = vsel %vm1305_vm6, %v1304_v38, %v1301_v37 }
 0x9dd   : > { %v1308_v40 = vsel %vm1307_vm7, %v1306_v39, 0.0 }
 0x9de   : > { %1309 = vst [vmem:[%s533_s30] sm:$0x3] %v1308_v40 }
 0x9df PF: > { %s26_s21 = sadd.s32 1, %s1676_s21  }
 0x9e0   : > { %p23_p4 = scmp.ge.s32.totalorder %s26_s21, 4  }
 0x9e2   :  { %25 = sbr.rel (!%p23_p4) target bundleno = 2 (0x2), region = 117 }

</bundles_post_ra>
